<compile_context>
chip_gen: v7x
topology: tpu7x:2x2x1
jax: 0.10.0
libtpu: 0.0.40
codegen_flags: <defaults>
</compile_context>

<pallas_src>
import functools
import math

import jax
import jax.numpy as jnp
from jax.experimental import pallas as pl
from jax.experimental.pallas import tpu as pltpu

BN_EPS = 1e-5
LANE = 128
SUBLANE_BF16 = 16   # bf16 sublane tile; keeps in-kernel reshapes layout-preserving


def _round_up(v, m):
    return ((v + m - 1) // m) * m


def _vmem_limit():
    """Generation-aware scoped-VMEM limit (review items: v6e raise / v7x cap)."""
    try:
        kind = jax.devices()[0].device_kind.lower()
    except Exception:
        kind = ""
    if ("v6" in kind) or ("v5e" in kind) or ("v5 lite" in kind) or ("v5p" in kind):
        return 96 * 1024 * 1024          # 128 MiB physical VMEM
    if "v7" in kind:
        return 48 * 1024 * 1024          # 64 MiB physical VMEM per TensorCore
    return 32 * 1024 * 1024              # conservative default (older/unknown chips)


def _pick_batch_tile(n, oh, vp, cp):
    """Images per grid step: fill M for the MXU, stay v7x-VMEM-safe, keep grid>=2."""
    # ~4 live (m, cp) f32 intermediates per step; keep them under ~12 MiB.
    budget_rows = max(oh * vp, (12 * 1024 * 1024) // (4 * cp * 4))
    bt = max(1, budget_rows // (oh * vp))
    if n >= 2:
        bt = min(bt, n // 2)             # >= 2 grid steps -> both v7x TensorCores busy
    bt = max(1, min(bt, n))
    while n % bt:                        # largest divisor of n not exceeding the cap
        bt -= 1
    return bt


# ------------------------------ Pallas kernels ------------------------------

def _nin_block_math(ph_ref, w1_ref, b1_ref, w2_ref, b2_ref, w3_ref, b3_ref,
                    *, oh, vp):
    """conv3x3/s2 (+folded BN bias) -> ReLU -> 1x1 -> ReLU -> 1x1 -> ReLU.

    ph_ref : (bt, 6, (oh+1)*vp, cin)  bf16, pre-shifted stride-2 phase planes
    w1_ref : (9, cin, cp)             bf16 per-tap weights (BN scale folded)
    w2/w3  : (cp, cp) bf16            b*: (1, cp) f32
    returns (bt*oh*vp, cp) f32; columns j >= ow of each vp-row group are junk.
    """
    bt = ph_ref.shape[0]
    cin = ph_ref.shape[-1]
    cp = w2_ref.shape[-1]
    m = bt * oh * vp

    acc = jnp.zeros((m, cp), jnp.float32)
    for kh in range(3):
        h0 = kh // 2
        for kw in range(3):
            # plane 3*(kh%2) + kw: kw=0 -> even cols, kw=1 -> odd cols,
            # kw=2 -> even cols pre-shifted by one column (built in the wrapper),
            # so every tap lands on the SAME output rows -> one accumulator,
            # no in-kernel cross-sublane shifts.
            plane = 3 * (kh % 2) + kw
            q = ph_ref[:, plane, h0 * vp:(h0 + oh) * vp, :]      # contiguous rows
            q = q.reshape(m, cin)                                # free (vp % 16 == 0)
            acc = acc + jnp.dot(q, w1_ref[3 * kh + kw],
                                preferred_element_type=jnp.float32)

    h = jnp.maximum(acc + b1_ref[...], 0.0)                      # f32 epilogue
    h = jnp.maximum(jnp.dot(h.astype(w2_ref.dtype), w2_ref[...],
                            preferred_element_type=jnp.float32) + b2_ref[...], 0.0)
    h = jnp.maximum(jnp.dot(h.astype(w3_ref.dtype), w3_ref[...],
                            preferred_element_type=jnp.float32) + b3_ref[...], 0.0)
    return h


def nin_block_kernel(ph_ref, w1_ref, b1_ref, w2_ref, b2_ref, w3_ref, b3_ref,
                     o_ref, *, oh, ow, vp):
    """One fused NiN block for B_TILE images; output at real channel count."""
    bt, _, _, c8 = o_ref.shape
    cp = w2_ref.shape[-1]
    h = _nin_block_math(ph_ref, w1_ref, b1_ref, w2_ref, b2_ref, w3_ref, b3_ref,
                        oh=oh, vp=vp)
    h = h.reshape(bt, oh, vp, cp)
    # drop junk columns / padded channels once, at the store
    o_ref[...] = h[:, :, :ow, :c8].astype(o_ref.dtype)


def nin_block_head_kernel(ph_ref, w1_ref, b1_ref, w2_ref, b2_ref, w3_ref, b3_ref,
                          wh_ref, bh_ref, o_ref, *, oh, ow, vp):
    """Last NiN block with the head (global avg pool + folded 1x1 + BN) fused in."""
    bt = ph_ref.shape[0]
    cp = w2_ref.shape[-1]
    h = _nin_block_math(ph_ref, w1_ref, b1_ref, w2_ref, b2_ref, w3_ref, b3_ref,
                        oh=oh, vp=vp)
    h4 = h.reshape(bt, oh, vp, cp)
    col = jax.lax.broadcasted_iota(jnp.int32, (bt, oh, vp, cp), 2)
    hm = jnp.where(col < ow, h4, 0.0).reshape(bt, oh * vp, cp)
    pooled = jnp.sum(hm, axis=1) * (1.0 / (oh * ow))             # (bt, cp) f32
    # mean commutes with the affine head (folded 1x1 conv + BN); f32 weights.
    y = jnp.dot(pooled, wh_ref[...], preferred_element_type=jnp.float32) + bh_ref[...]
    o_ref[...] = y[:, None, :].astype(o_ref.dtype)


# --------------------------- pallas_call wrappers ---------------------------

def _const_spec(arr):
    """Full-array block, constant index map: resident across the grid (no re-DMA)."""
    nd = arr.ndim
    return pl.BlockSpec(arr.shape, lambda *_: (0,) * nd)


def _bytes(arrs):
    return sum(int(a.size) * a.dtype.itemsize for a in arrs)


def nin_block_call(ph, weights, *, oh, ow, vp, cp, c8, bt):
    n = ph.shape[0]
    cin = ph.shape[-1]
    grid = (n // bt,)
    in_specs = ([pl.BlockSpec((bt, 6, (oh + 1) * vp, cin), lambda i: (i, 0, 0, 0))]
                + [_const_spec(a) for a in weights])
    out_spec = pl.BlockSpec((bt, oh, ow, c8), lambda i: (i, 0, 0, 0))
    flops = 2 * n * oh * vp * (9 * cin * cp + 2 * cp * cp)
    bytes_accessed = _bytes([ph]) + _bytes(weights) + n * oh * ow * c8 * 2
    return pl.pallas_call(
        functools.partial(nin_block_kernel, oh=oh, ow=ow, vp=vp),
        out_shape=jax.ShapeDtypeStruct((n, oh, ow, c8), jnp.bfloat16),
        grid=grid,
        in_specs=in_specs,
        out_specs=out_spec,
        compiler_params=pltpu.CompilerParams(
            dimension_semantics=("parallel",),
            vmem_limit_bytes=_vmem_limit()),
        cost_estimate=pl.CostEstimate(flops=int(flops), transcendentals=0,
                                      bytes_accessed=int(bytes_accessed)),
    )(ph, *weights)


def nin_block_head_call(ph, weights, wh, bh, *, oh, ow, vp, cp, kpad, bt):
    n = ph.shape[0]
    cin = ph.shape[-1]
    grid = (n // bt,)
    in_specs = ([pl.BlockSpec((bt, 6, (oh + 1) * vp, cin), lambda i: (i, 0, 0, 0))]
                + [_const_spec(a) for a in weights]
                + [_const_spec(wh), _const_spec(bh)])
    out_spec = pl.BlockSpec((bt, 1, kpad), lambda i: (i, 0, 0))
    flops = 2 * n * oh * vp * (9 * cin * cp + 2 * cp * cp) + 2 * n * cp * kpad
    bytes_accessed = (_bytes([ph]) + _bytes(weights) + _bytes([wh, bh])
                      + n * kpad * 4)
    return pl.pallas_call(
        functools.partial(nin_block_head_kernel, oh=oh, ow=ow, vp=vp),
        out_shape=jax.ShapeDtypeStruct((n, 1, kpad), jnp.float32),
        grid=grid,
        in_specs=in_specs,
        out_specs=out_spec,
        compiler_params=pltpu.CompilerParams(
            dimension_semantics=("parallel",),
            vmem_limit_bytes=_vmem_limit()),
        cost_estimate=pl.CostEstimate(flops=int(flops), transcendentals=0,
                                      bytes_accessed=int(bytes_accessed)),
    )(ph, *weights, wh, bh)


# --------------------------- glue / parameter prep ---------------------------

def pad_and_phase(x_nhwc):
    """Zero-pad (pad=1) and build SIX stride-2 phase planes (bf16, real channels).

    Plane layout (index p = 3*r + c, r = row parity):
      c=0: even padded columns (taps kw=0)      P[b,u,v] = xpad[b, 2u+r, 2v    ]
      c=1: odd  padded columns (taps kw=1)                 xpad[b, 2u+r, 2v + 1]
      c=2: even columns shifted by one (kw=2)              xpad[b, 2u+r, 2v + 2]
    so tap (kh,kw) of the 3x3/s2 conv only needs rows [kh//2, kh//2+oh) of plane
    3*(kh%2)+kw -- a contiguous row range in the pre-flattened (oh+1)*vp layout.
    vp is rounded up to the bf16 sublane tile so in-kernel reshapes stay free.
    """
    n, h, w, c = x_nhwc.shape
    oh = (h - 1) // 2 + 1
    ow = (w - 1) // 2 + 1
    vp = _round_up(ow + 1, SUBLANE_BF16)
    hp, wp = 2 * (oh + 1), 2 * vp
    xp = jnp.pad(x_nhwc, ((0, 0), (1, hp - h - 1), (1, wp - w - 1), (0, 0)))
    planes = []
    for r in (0, 1):
        p0 = xp[:, r::2, 0::2, :]                                 # (n, oh+1, vp, c)
        p1 = xp[:, r::2, 1::2, :]
        p2 = jnp.concatenate([p0[:, :, 1:, :],
                              jnp.zeros_like(p0[:, :, :1, :])], axis=2)
        planes += [p0, p1, p2]
    ph = jnp.stack(planes, axis=1)                                # (n, 6, oh+1, vp, c)
    ph = ph.reshape(n, 6, (oh + 1) * vp, c)                       # rows pre-flattened
    return ph, oh, ow, vp


def fold_conv_bn(w, b, bn, cin_pad, cout_pad, dtype=jnp.bfloat16):
    """Fold conv bias + eval-mode BN into matmul weights (cast to `dtype`) and an
    f32 bias, zero-padded to (cin_pad, cout_pad)."""
    gamma, beta, mean, var = bn
    s = gamma / jnp.sqrt(var + BN_EPS)
    bias = beta + s * (b - mean)
    cout, cin, kh, kw = w.shape
    wf = w * s[:, None, None, None]                               # BN scale -> weights
    wm = jnp.transpose(wf, (2, 3, 1, 0)).reshape(kh * kw, cin, cout)
    wm = jnp.pad(wm, ((0, 0), (0, cin_pad - cin), (0, cout_pad - cout)))
    if kh * kw == 1:
        wm = wm[0]                                                # (cin_pad, cout_pad)
    bp = jnp.pad(bias, (0, cout_pad - cout)).reshape(1, cout_pad).astype(jnp.float32)
    return wm.astype(dtype), bp


def conv_init(key, cout, cin, kh, kw):
    wkey, bkey = jax.random.split(key)
    fan_in = cin * kh * kw
    w = jax.random.normal(wkey, (cout, cin, kh, kw), jnp.float32) / math.sqrt(fan_in)
    b = 0.05 * jax.random.normal(bkey, (cout,), jnp.float32)
    return w, b


def bn_init(key, c):
    k1, k2, k3, k4 = jax.random.split(key, 4)
    gamma = 1.0 + 0.1 * jax.random.normal(k1, (c,), jnp.float32)
    beta = 0.1 * jax.random.normal(k2, (c,), jnp.float32)
    mean = 0.1 * jax.random.normal(k3, (c,), jnp.float32)
    var = 1.0 + 0.5 * jax.random.uniform(k4, (c,), jnp.float32)
    return gamma, beta, mean, var


def make_params(key, depth, width, base_width, in_channels, num_classes):
    planes = base_width * width
    keys = jax.random.split(key, depth + 1)
    blocks = []
    cin = in_channels
    for d in range(depth):
        bk = jax.random.split(keys[d], 6)
        blocks.append(dict(
            conv1=conv_init(bk[0], planes, cin, 3, 3), bn1=bn_init(bk[1], planes),
            conv2=conv_init(bk[2], planes, planes, 1, 1), bn2=bn_init(bk[3], planes),
            conv3=conv_init(bk[4], planes, planes, 1, 1), bn3=bn_init(bk[5], planes),
        ))
        cin = planes
    hk = jax.random.split(keys[depth], 2)
    head = dict(conv=conv_init(hk[0], num_classes, planes, 1, 1),
                bn=bn_init(hk[1], num_classes))
    return dict(blocks=blocks, head=head)


# ------------------------------ forward passes ------------------------------

def nin_forward(x_nchw, params):
    blocks = params['blocks']
    planes = blocks[0]['conv1'][0].shape[0]
    num_classes = params['head']['conv'][0].shape[0]
    cp = _round_up(planes, LANE)        # lane-dense padded width, VMEM/weights only
    c8 = _round_up(planes, 8)           # real(ish) channel count kept in HBM
    kpad = _round_up(num_classes, LANE)
    n = x_nchw.shape[0]

    x = jnp.transpose(x_nchw, (0, 2, 3, 1)).astype(jnp.bfloat16)  # NCHW -> NHWC, bf16

    def block_weights(blk, cin):
        w1, b1 = fold_conv_bn(*blk['conv1'], blk['bn1'], cin, cp)
        w2, b2 = fold_conv_bn(*blk['conv2'], blk['bn2'], cp, cp)
        w3, b3 = fold_conv_bn(*blk['conv3'], blk['bn3'], cp, cp)
        return (w1, b1, w2, b2, w3, b3)

    # all blocks except the last: fused block kernel, bf16 activation to HBM
    for blk in blocks[:-1]:
        cin = x.shape[-1]
        ph, oh, ow, vp = pad_and_phase(x)
        bt = _pick_batch_tile(n, oh, vp, cp)
        x = nin_block_call(ph, block_weights(blk, cin),
                           oh=oh, ow=ow, vp=vp, cp=cp, c8=c8, bt=bt)

    # last block with the head (avg pool + folded 1x1 conv + BN) fused in
    blk = blocks[-1]
    cin = x.shape[-1]
    ph, oh, ow, vp = pad_and_phase(x)
    bt = _pick_batch_tile(n, oh, vp, cp)
    wh, bh = fold_conv_bn(*params['head']['conv'], params['head']['bn'],
                          cp, kpad, dtype=jnp.float32)
    logits = nin_block_head_call(ph, block_weights(blk, cin), wh, bh,
                                 oh=oh, ow=ow, vp=vp, cp=cp, kpad=kpad, bt=bt)
    # (N, K): matches torch `.squeeze()` of (N, K, 1, 1) for N > 1.
    return logits[:, 0, :num_classes]


def ref_forward(x, params):
    """Pure-JAX f32 reference mirroring the PyTorch forward (eval-mode BN)."""
    def conv(x, w, b, stride, pad):
        y = jax.lax.conv_general_dilated(
            x, w, (stride, stride), [(pad, pad), (pad, pad)],
            dimension_numbers=('NCHW', 'OIHW', 'NCHW'),
            precision=jax.lax.Precision.HIGHEST)
        return y + b[None, :, None, None]

    def bn(x, p):
        gamma, beta, mean, var = (t[None, :, None, None] for t in p)
        return (x - mean) / jnp.sqrt(var + BN_EPS) * gamma + beta

    for blk in params['blocks']:
        x = jnp.maximum(bn(conv(x, *blk['conv1'], 2, 1), blk['bn1']), 0.0)
        x = jnp.maximum(bn(conv(x, *blk['conv2'], 1, 0), blk['bn2']), 0.0)
        x = jnp.maximum(bn(conv(x, *blk['conv3'], 1, 0), blk['bn3']), 0.0)
    x = bn(conv(x, *params['head']['conv'], 1, 0), params['head']['bn'])
    return jnp.mean(x, axis=(2, 3))


# ----------------------------------- main -----------------------------------

if __name__ == "__main__":
    # Small synthetic config: depth=2, width=1, base_width=8 -> planes=8;
    # dataset_type.D[0]=4 input channels, dataset_type.K=8 classes.
    N, C0, H, W = 2, 4, 16, 16
    depth, width, base_width, K = 2, 1, 8, 8

    key = jax.random.PRNGKey(0)
    pkey, xkey = jax.random.split(key)
    params = make_params(pkey, depth, width, base_width, C0, K)
    x = jax.random.normal(xkey, (N, C0, H, W), jnp.float32)       # NCHW, like PyTorch

    fwd = jax.jit(nin_forward)
    out = jax.block_until_ready(fwd(x, params))
    assert out.shape == (N, K), out.shape

    # Numerical check against the f32 HIGHEST-precision reference.  The kernel
    # deliberately stores activations/weights in bf16 and uses bf16 MXU passes
    # with f32 accumulation (per review), so the tolerance is sized for that.
    ref = jax.block_until_ready(ref_forward(x, params))
    err = float(jnp.max(jnp.abs(out - ref)))
    assert jnp.allclose(out, ref, rtol=3e-2, atol=3e-2), err

    print("KERNEL_OK")
</pallas_src>

<mosaic_0001>
module attributes {stable_mosaic.version = 11 : i64} {
  func.func @nin_block_kernel(%arg0: i32, %arg1: memref<1x6x144x4xbf16, #tpu.memory_space<vmem>>, %arg2: memref<9x4x128xbf16, #tpu.memory_space<vmem>>, %arg3: memref<1x128xf32, #tpu.memory_space<vmem>>, %arg4: memref<128x128xbf16, #tpu.memory_space<vmem>>, %arg5: memref<1x128xf32, #tpu.memory_space<vmem>>, %arg6: memref<128x128xbf16, #tpu.memory_space<vmem>>, %arg7: memref<1x128xf32, #tpu.memory_space<vmem>>, %arg8: memref<1x8x8x8xbf16, #tpu.memory_space<vmem>>) attributes {dimension_semantics = [#tpu.dimension_semantics<parallel>], iteration_bounds = array<i64: 2>, scalar_prefetch = 0 : i64, scratch_operands = 0 : i64, tpu.core_type = #tpu.core_type<tc>, window_params = [{transform_indices = @transform_0, window_bounds = array<i64: 1, 6, 144, 4>}, {pipeline_mode = #tpu.pipeline_mode<synchronous>, transform_indices = @transform_1, window_bounds = array<i64: 9, 4, 128>}, {pipeline_mode = #tpu.pipeline_mode<synchronous>, transform_indices = @transform_2, window_bounds = array<i64: 1, 128>}, {pipeline_mode = #tpu.pipeline_mode<synchronous>, transform_indices = @transform_3, window_bounds = array<i64: 128, 128>}, {pipeline_mode = #tpu.pipeline_mode<synchronous>, transform_indices = @transform_4, window_bounds = array<i64: 1, 128>}, {pipeline_mode = #tpu.pipeline_mode<synchronous>, transform_indices = @transform_5, window_bounds = array<i64: 128, 128>}, {pipeline_mode = #tpu.pipeline_mode<synchronous>, transform_indices = @transform_6, window_bounds = array<i64: 1, 128>}, {transform_indices = @transform_7, window_bounds = array<i64: 1, 8, 8, 8>}]} {
    %cst = arith.constant 0.000000e+00 : f32
    %0 = vector.broadcast %cst : f32 to vector<128x128xf32>
    %c0 = arith.constant 0 : index
    %c0_0 = arith.constant 0 : index
    %c0_1 = arith.constant 0 : index
    %c0_2 = arith.constant 0 : index
    %1 = vector.load %arg1[%c0, %c0_0, %c0_1, %c0_2] : memref<1x6x144x4xbf16, #tpu.memory_space<vmem>>, vector<1x1x128x4xbf16>
    %2 = vector.shape_cast %1 : vector<1x1x128x4xbf16> to vector<1x128x4xbf16>
    %3 = vector.shape_cast %2 : vector<1x128x4xbf16> to vector<128x4xbf16>
    %c0_3 = arith.constant 0 : index
    %c0_4 = arith.constant 0 : index
    %c0_5 = arith.constant 0 : index
    %4 = vector.load %arg2[%c0_3, %c0_4, %c0_5] : memref<9x4x128xbf16, #tpu.memory_space<vmem>>, vector<1x4x128xbf16>
    %5 = vector.shape_cast %4 : vector<1x4x128xbf16> to vector<4x128xbf16>
    %cst_6 = arith.constant dense<0.000000e+00> : vector<128x128xf32>
    %6 = tpu.matmul %3, %5, %cst_6 {dimension_numbers = #tpu.dot_dimension_numbers<[1], [0], [0], [1], [0, 0, 1, 1], [], []>} : vector<128x4xbf16>, vector<4x128xbf16>, vector<128x128xf32> -> vector<128x128xf32>
    %7 = arith.addf %0, %6 : vector<128x128xf32>
    %c0_7 = arith.constant 0 : index
    %c1 = arith.constant 1 : index
    %c0_8 = arith.constant 0 : index
    %c0_9 = arith.constant 0 : index
    %8 = vector.load %arg1[%c0_7, %c1, %c0_8, %c0_9] : memref<1x6x144x4xbf16, #tpu.memory_space<vmem>>, vector<1x1x128x4xbf16>
    %9 = vector.shape_cast %8 : vector<1x1x128x4xbf16> to vector<1x128x4xbf16>
    %10 = vector.shape_cast %9 : vector<1x128x4xbf16> to vector<128x4xbf16>
    %c1_10 = arith.constant 1 : index
    %c0_11 = arith.constant 0 : index
    %c0_12 = arith.constant 0 : index
    %11 = vector.load %arg2[%c1_10, %c0_11, %c0_12] : memref<9x4x128xbf16, #tpu.memory_space<vmem>>, vector<1x4x128xbf16>
    %12 = vector.shape_cast %11 : vector<1x4x128xbf16> to vector<4x128xbf16>
    %cst_13 = arith.constant dense<0.000000e+00> : vector<128x128xf32>
    %13 = tpu.matmul %10, %12, %cst_13 {dimension_numbers = #tpu.dot_dimension_numbers<[1], [0], [0], [1], [0, 0, 1, 1], [], []>} : vector<128x4xbf16>, vector<4x128xbf16>, vector<128x128xf32> -> vector<128x128xf32>
    %14 = arith.addf %7, %13 : vector<128x128xf32>
    %c0_14 = arith.constant 0 : index
    %c2 = arith.constant 2 : index
    %c0_15 = arith.constant 0 : index
    %c0_16 = arith.constant 0 : index
    %15 = vector.load %arg1[%c0_14, %c2, %c0_15, %c0_16] : memref<1x6x144x4xbf16, #tpu.memory_space<vmem>>, vector<1x1x128x4xbf16>
    %16 = vector.shape_cast %15 : vector<1x1x128x4xbf16> to vector<1x128x4xbf16>
    %17 = vector.shape_cast %16 : vector<1x128x4xbf16> to vector<128x4xbf16>
    %c2_17 = arith.constant 2 : index
    %c0_18 = arith.constant 0 : index
    %c0_19 = arith.constant 0 : index
    %18 = vector.load %arg2[%c2_17, %c0_18, %c0_19] : memref<9x4x128xbf16, #tpu.memory_space<vmem>>, vector<1x4x128xbf16>
    %19 = vector.shape_cast %18 : vector<1x4x128xbf16> to vector<4x128xbf16>
    %cst_20 = arith.constant dense<0.000000e+00> : vector<128x128xf32>
    %20 = tpu.matmul %17, %19, %cst_20 {dimension_numbers = #tpu.dot_dimension_numbers<[1], [0], [0], [1], [0, 0, 1, 1], [], []>} : vector<128x4xbf16>, vector<4x128xbf16>, vector<128x128xf32> -> vector<128x128xf32>
    %21 = arith.addf %14, %20 : vector<128x128xf32>
    %c0_21 = arith.constant 0 : index
    %c3 = arith.constant 3 : index
    %c0_22 = arith.constant 0 : index
    %c0_23 = arith.constant 0 : index
    %22 = vector.load %arg1[%c0_21, %c3, %c0_22, %c0_23] : memref<1x6x144x4xbf16, #tpu.memory_space<vmem>>, vector<1x1x128x4xbf16>
    %23 = vector.shape_cast %22 : vector<1x1x128x4xbf16> to vector<1x128x4xbf16>
    %24 = vector.shape_cast %23 : vector<1x128x4xbf16> to vector<128x4xbf16>
    %c3_24 = arith.constant 3 : index
    %c0_25 = arith.constant 0 : index
    %c0_26 = arith.constant 0 : index
    %25 = vector.load %arg2[%c3_24, %c0_25, %c0_26] : memref<9x4x128xbf16, #tpu.memory_space<vmem>>, vector<1x4x128xbf16>
    %26 = vector.shape_cast %25 : vector<1x4x128xbf16> to vector<4x128xbf16>
    %cst_27 = arith.constant dense<0.000000e+00> : vector<128x128xf32>
    %27 = tpu.matmul %24, %26, %cst_27 {dimension_numbers = #tpu.dot_dimension_numbers<[1], [0], [0], [1], [0, 0, 1, 1], [], []>} : vector<128x4xbf16>, vector<4x128xbf16>, vector<128x128xf32> -> vector<128x128xf32>
    %28 = arith.addf %21, %27 : vector<128x128xf32>
    %c0_28 = arith.constant 0 : index
    %c4 = arith.constant 4 : index
    %c0_29 = arith.constant 0 : index
    %c0_30 = arith.constant 0 : index
    %29 = vector.load %arg1[%c0_28, %c4, %c0_29, %c0_30] : memref<1x6x144x4xbf16, #tpu.memory_space<vmem>>, vector<1x1x128x4xbf16>
    %30 = vector.shape_cast %29 : vector<1x1x128x4xbf16> to vector<1x128x4xbf16>
    %31 = vector.shape_cast %30 : vector<1x128x4xbf16> to vector<128x4xbf16>
    %c4_31 = arith.constant 4 : index
    %c0_32 = arith.constant 0 : index
    %c0_33 = arith.constant 0 : index
    %32 = vector.load %arg2[%c4_31, %c0_32, %c0_33] : memref<9x4x128xbf16, #tpu.memory_space<vmem>>, vector<1x4x128xbf16>
    %33 = vector.shape_cast %32 : vector<1x4x128xbf16> to vector<4x128xbf16>
    %cst_34 = arith.constant dense<0.000000e+00> : vector<128x128xf32>
    %34 = tpu.matmul %31, %33, %cst_34 {dimension_numbers = #tpu.dot_dimension_numbers<[1], [0], [0], [1], [0, 0, 1, 1], [], []>} : vector<128x4xbf16>, vector<4x128xbf16>, vector<128x128xf32> -> vector<128x128xf32>
    %35 = arith.addf %28, %34 : vector<128x128xf32>
    %c0_35 = arith.constant 0 : index
    %c5 = arith.constant 5 : index
    %c0_36 = arith.constant 0 : index
    %c0_37 = arith.constant 0 : index
    %36 = vector.load %arg1[%c0_35, %c5, %c0_36, %c0_37] : memref<1x6x144x4xbf16, #tpu.memory_space<vmem>>, vector<1x1x128x4xbf16>
    %37 = vector.shape_cast %36 : vector<1x1x128x4xbf16> to vector<1x128x4xbf16>
    %38 = vector.shape_cast %37 : vector<1x128x4xbf16> to vector<128x4xbf16>
    %c5_38 = arith.constant 5 : index
    %c0_39 = arith.constant 0 : index
    %c0_40 = arith.constant 0 : index
    %39 = vector.load %arg2[%c5_38, %c0_39, %c0_40] : memref<9x4x128xbf16, #tpu.memory_space<vmem>>, vector<1x4x128xbf16>
    %40 = vector.shape_cast %39 : vector<1x4x128xbf16> to vector<4x128xbf16>
    %cst_41 = arith.constant dense<0.000000e+00> : vector<128x128xf32>
    %41 = tpu.matmul %38, %40, %cst_41 {dimension_numbers = #tpu.dot_dimension_numbers<[1], [0], [0], [1], [0, 0, 1, 1], [], []>} : vector<128x4xbf16>, vector<4x128xbf16>, vector<128x128xf32> -> vector<128x128xf32>
    %42 = arith.addf %35, %41 : vector<128x128xf32>
    %c0_42 = arith.constant 0 : index
    %c0_43 = arith.constant 0 : index
    %c16 = arith.constant 16 : index
    %c0_44 = arith.constant 0 : index
    %43 = vector.load %arg1[%c0_42, %c0_43, %c16, %c0_44] : memref<1x6x144x4xbf16, #tpu.memory_space<vmem>>, vector<1x1x128x4xbf16>
    %44 = vector.shape_cast %43 : vector<1x1x128x4xbf16> to vector<1x128x4xbf16>
    %45 = vector.shape_cast %44 : vector<1x128x4xbf16> to vector<128x4xbf16>
    %c6 = arith.constant 6 : index
    %c0_45 = arith.constant 0 : index
    %c0_46 = arith.constant 0 : index
    %46 = vector.load %arg2[%c6, %c0_45, %c0_46] : memref<9x4x128xbf16, #tpu.memory_space<vmem>>, vector<1x4x128xbf16>
    %47 = vector.shape_cast %46 : vector<1x4x128xbf16> to vector<4x128xbf16>
    %cst_47 = arith.constant dense<0.000000e+00> : vector<128x128xf32>
    %48 = tpu.matmul %45, %47, %cst_47 {dimension_numbers = #tpu.dot_dimension_numbers<[1], [0], [0], [1], [0, 0, 1, 1], [], []>} : vector<128x4xbf16>, vector<4x128xbf16>, vector<128x128xf32> -> vector<128x128xf32>
    %49 = arith.addf %42, %48 : vector<128x128xf32>
    %c0_48 = arith.constant 0 : index
    %c1_49 = arith.constant 1 : index
    %c16_50 = arith.constant 16 : index
    %c0_51 = arith.constant 0 : index
    %50 = vector.load %arg1[%c0_48, %c1_49, %c16_50, %c0_51] : memref<1x6x144x4xbf16, #tpu.memory_space<vmem>>, vector<1x1x128x4xbf16>
    %51 = vector.shape_cast %50 : vector<1x1x128x4xbf16> to vector<1x128x4xbf16>
    %52 = vector.shape_cast %51 : vector<1x128x4xbf16> to vector<128x4xbf16>
    %c7 = arith.constant 7 : index
    %c0_52 = arith.constant 0 : index
    %c0_53 = arith.constant 0 : index
    %53 = vector.load %arg2[%c7, %c0_52, %c0_53] : memref<9x4x128xbf16, #tpu.memory_space<vmem>>, vector<1x4x128xbf16>
    %54 = vector.shape_cast %53 : vector<1x4x128xbf16> to vector<4x128xbf16>
    %cst_54 = arith.constant dense<0.000000e+00> : vector<128x128xf32>
    %55 = tpu.matmul %52, %54, %cst_54 {dimension_numbers = #tpu.dot_dimension_numbers<[1], [0], [0], [1], [0, 0, 1, 1], [], []>} : vector<128x4xbf16>, vector<4x128xbf16>, vector<128x128xf32> -> vector<128x128xf32>
    %56 = arith.addf %49, %55 : vector<128x128xf32>
    %c0_55 = arith.constant 0 : index
    %c2_56 = arith.constant 2 : index
    %c16_57 = arith.constant 16 : index
    %c0_58 = arith.constant 0 : index
    %57 = vector.load %arg1[%c0_55, %c2_56, %c16_57, %c0_58] : memref<1x6x144x4xbf16, #tpu.memory_space<vmem>>, vector<1x1x128x4xbf16>
    %58 = vector.shape_cast %57 : vector<1x1x128x4xbf16> to vector<1x128x4xbf16>
    %59 = vector.shape_cast %58 : vector<1x128x4xbf16> to vector<128x4xbf16>
    %c8 = arith.constant 8 : index
    %c0_59 = arith.constant 0 : index
    %c0_60 = arith.constant 0 : index
    %60 = vector.load %arg2[%c8, %c0_59, %c0_60] : memref<9x4x128xbf16, #tpu.memory_space<vmem>>, vector<1x4x128xbf16>
    %61 = vector.shape_cast %60 : vector<1x4x128xbf16> to vector<4x128xbf16>
    %cst_61 = arith.constant dense<0.000000e+00> : vector<128x128xf32>
    %62 = tpu.matmul %59, %61, %cst_61 {dimension_numbers = #tpu.dot_dimension_numbers<[1], [0], [0], [1], [0, 0, 1, 1], [], []>} : vector<128x4xbf16>, vector<4x128xbf16>, vector<128x128xf32> -> vector<128x128xf32>
    %63 = arith.addf %56, %62 : vector<128x128xf32>
    %c0_62 = arith.constant 0 : index
    %c0_63 = arith.constant 0 : index
    %64 = vector.load %arg3[%c0_62, %c0_63] : memref<1x128xf32, #tpu.memory_space<vmem>>, vector<1x128xf32>
    %65 = vector.broadcast %64 : vector<1x128xf32> to vector<128x128xf32>
    %66 = arith.addf %63, %65 : vector<128x128xf32>
    %cst_64 = arith.constant 0.000000e+00 : f32
    %67 = vector.broadcast %cst_64 : f32 to vector<128x128xf32>
    %68 = arith.maximumf %66, %67 : vector<128x128xf32>
    %69 = arith.truncf %68 : vector<128x128xf32> to vector<128x128xbf16>
    %c0_65 = arith.constant 0 : index
    %c0_66 = arith.constant 0 : index
    %70 = vector.load %arg4[%c0_65, %c0_66] : memref<128x128xbf16, #tpu.memory_space<vmem>>, vector<128x128xbf16>
    %cst_67 = arith.constant dense<0.000000e+00> : vector<128x128xf32>
    %71 = tpu.matmul %69, %70, %cst_67 {dimension_numbers = #tpu.dot_dimension_numbers<[1], [0], [0], [1], [0, 0, 1, 1], [], []>} : vector<128x128xbf16>, vector<128x128xbf16>, vector<128x128xf32> -> vector<128x128xf32>
    %c0_68 = arith.constant 0 : index
    %c0_69 = arith.constant 0 : index
    %72 = vector.load %arg5[%c0_68, %c0_69] : memref<1x128xf32, #tpu.memory_space<vmem>>, vector<1x128xf32>
    %73 = vector.broadcast %72 : vector<1x128xf32> to vector<128x128xf32>
    %74 = arith.addf %71, %73 : vector<128x128xf32>
    %cst_70 = arith.constant 0.000000e+00 : f32
    %75 = vector.broadcast %cst_70 : f32 to vector<128x128xf32>
    %76 = arith.maximumf %74, %75 : vector<128x128xf32>
    %77 = arith.truncf %76 : vector<128x128xf32> to vector<128x128xbf16>
    %c0_71 = arith.constant 0 : index
    %c0_72 = arith.constant 0 : index
    %78 = vector.load %arg6[%c0_71, %c0_72] : memref<128x128xbf16, #tpu.memory_space<vmem>>, vector<128x128xbf16>
    %cst_73 = arith.constant dense<0.000000e+00> : vector<128x128xf32>
    %79 = tpu.matmul %77, %78, %cst_73 {dimension_numbers = #tpu.dot_dimension_numbers<[1], [0], [0], [1], [0, 0, 1, 1], [], []>} : vector<128x128xbf16>, vector<128x128xbf16>, vector<128x128xf32> -> vector<128x128xf32>
    %c0_74 = arith.constant 0 : index
    %c0_75 = arith.constant 0 : index
    %80 = vector.load %arg7[%c0_74, %c0_75] : memref<1x128xf32, #tpu.memory_space<vmem>>, vector<1x128xf32>
    %81 = vector.broadcast %80 : vector<1x128xf32> to vector<128x128xf32>
    %82 = arith.addf %79, %81 : vector<128x128xf32>
    %cst_76 = arith.constant 0.000000e+00 : f32
    %83 = vector.broadcast %cst_76 : f32 to vector<128x128xf32>
    %84 = arith.maximumf %82, %83 : vector<128x128xf32>
    %85 = vector.shape_cast %84 : vector<128x128xf32> to vector<1x8x16x128xf32>
    %86 = vector.extract_strided_slice %85 {offsets = [0, 0, 0, 0], sizes = [1, 8, 8, 8], strides = [1, 1, 1, 1]} : vector<1x8x16x128xf32> to vector<1x8x8x8xf32>
    %87 = arith.truncf %86 : vector<1x8x8x8xf32> to vector<1x8x8x8xbf16>
    %c0_77 = arith.constant 0 : index
    %c0_78 = arith.constant 0 : index
    %c0_79 = arith.constant 0 : index
    %c0_80 = arith.constant 0 : index
    %88 = vector.load %arg8[%c0_77, %c0_78, %c0_79, %c0_80] : memref<1x8x8x8xbf16, #tpu.memory_space<vmem>>, vector<1x8x8x8xbf16>
    tpu.vector_store %arg8[%c0_77, %c0_78, %c0_79, %c0_80], %87 {strides = array<i32>} : memref<1x8x8x8xbf16, #tpu.memory_space<vmem>>, vector<1x8x8x8xbf16>,
    return
  }
  func.func @transform_0(%arg0: i32) -> (i32, i32, i32, i32) {
    %c0_i32 = arith.constant 0 : i32
    %c0_i32_0 = arith.constant 0 : i32
    %c0_i32_1 = arith.constant 0 : i32
    %c0_i32_2 = arith.constant 0 : i32
    return %arg0, %c0_i32, %c0_i32_0, %c0_i32_1 : i32, i32, i32, i32
  }
  func.func @transform_1(%arg0: i32) -> (i32, i32, i32) {
    %c0_i32 = arith.constant 0 : i32
    %c0_i32_0 = arith.constant 0 : i32
    %c0_i32_1 = arith.constant 0 : i32
    %c0_i32_2 = arith.constant 0 : i32
    return %c0_i32, %c0_i32_0, %c0_i32_1 : i32, i32, i32
  }
  func.func @transform_2(%arg0: i32) -> (i32, i32) {
    %c0_i32 = arith.constant 0 : i32
    %c0_i32_0 = arith.constant 0 : i32
    %c0_i32_1 = arith.constant 0 : i32
    return %c0_i32, %c0_i32_0 : i32, i32
  }
  func.func @transform_3(%arg0: i32) -> (i32, i32) {
    %c0_i32 = arith.constant 0 : i32
    %c0_i32_0 = arith.constant 0 : i32
    %c0_i32_1 = arith.constant 0 : i32
    return %c0_i32, %c0_i32_0 : i32, i32
  }
  func.func @transform_4(%arg0: i32) -> (i32, i32) {
    %c0_i32 = arith.constant 0 : i32
    %c0_i32_0 = arith.constant 0 : i32
    %c0_i32_1 = arith.constant 0 : i32
    return %c0_i32, %c0_i32_0 : i32, i32
  }
  func.func @transform_5(%arg0: i32) -> (i32, i32) {
    %c0_i32 = arith.constant 0 : i32
    %c0_i32_0 = arith.constant 0 : i32
    %c0_i32_1 = arith.constant 0 : i32
    return %c0_i32, %c0_i32_0 : i32, i32
  }
  func.func @transform_6(%arg0: i32) -> (i32, i32) {
    %c0_i32 = arith.constant 0 : i32
    %c0_i32_0 = arith.constant 0 : i32
    %c0_i32_1 = arith.constant 0 : i32
    return %c0_i32, %c0_i32_0 : i32, i32
  }
  func.func @transform_7(%arg0: i32) -> (i32, i32, i32, i32) {
    %c0_i32 = arith.constant 0 : i32
    %c0_i32_0 = arith.constant 0 : i32
    %c0_i32_1 = arith.constant 0 : i32
    %c0_i32_2 = arith.constant 0 : i32
    return %arg0, %c0_i32, %c0_i32_0, %c0_i32_1 : i32, i32, i32, i32
  }
}

module attributes {stable_mosaic.version = 11 : i64} {
  func.func @nin_block_head_kernel(%arg0: i32, %arg1: memref<1x6x80x8xbf16, #tpu.memory_space<vmem>>, %arg2: memref<9x8x128xbf16, #tpu.memory_space<vmem>>, %arg3: memref<1x128xf32, #tpu.memory_space<vmem>>, %arg4: memref<128x128xbf16, #tpu.memory_space<vmem>>, %arg5: memref<1x128xf32, #tpu.memory_space<vmem>>, %arg6: memref<128x128xbf16, #tpu.memory_space<vmem>>, %arg7: memref<1x128xf32, #tpu.memory_space<vmem>>, %arg8: memref<128x128xf32, #tpu.memory_space<vmem>>, %arg9: memref<1x128xf32, #tpu.memory_space<vmem>>, %arg10: memref<1x1x128xf32, #tpu.memory_space<vmem>>) attributes {dimension_semantics = [#tpu.dimension_semantics<parallel>], iteration_bounds = array<i64: 2>, scalar_prefetch = 0 : i64, scratch_operands = 0 : i64, tpu.core_type = #tpu.core_type<tc>, window_params = [{transform_indices = @transform_0, window_bounds = array<i64: 1, 6, 80, 8>}, {pipeline_mode = #tpu.pipeline_mode<synchronous>, transform_indices = @transform_1, window_bounds = array<i64: 9, 8, 128>}, {pipeline_mode = #tpu.pipeline_mode<synchronous>, transform_indices = @transform_2, window_bounds = array<i64: 1, 128>}, {pipeline_mode = #tpu.pipeline_mode<synchronous>, transform_indices = @transform_3, window_bounds = array<i64: 128, 128>}, {pipeline_mode = #tpu.pipeline_mode<synchronous>, transform_indices = @transform_4, window_bounds = array<i64: 1, 128>}, {pipeline_mode = #tpu.pipeline_mode<synchronous>, transform_indices = @transform_5, window_bounds = array<i64: 128, 128>}, {pipeline_mode = #tpu.pipeline_mode<synchronous>, transform_indices = @transform_6, window_bounds = array<i64: 1, 128>}, {pipeline_mode = #tpu.pipeline_mode<synchronous>, transform_indices = @transform_7, window_bounds = array<i64: 128, 128>}, {pipeline_mode = #tpu.pipeline_mode<synchronous>, transform_indices = @transform_8, window_bounds = array<i64: 1, 128>}, {transform_indices = @transform_9, window_bounds = array<i64: 1, 1, 128>}]} {
    %cst = arith.constant 0.000000e+00 : f32
    %0 = vector.broadcast %cst : f32 to vector<64x128xf32>
    %c0 = arith.constant 0 : index
    %c0_0 = arith.constant 0 : index
    %c0_1 = arith.constant 0 : index
    %c0_2 = arith.constant 0 : index
    %1 = vector.load %arg1[%c0, %c0_0, %c0_1, %c0_2] : memref<1x6x80x8xbf16, #tpu.memory_space<vmem>>, vector<1x1x64x8xbf16>
    %2 = vector.shape_cast %1 : vector<1x1x64x8xbf16> to vector<1x64x8xbf16>
    %3 = vector.shape_cast %2 : vector<1x64x8xbf16> to vector<64x8xbf16>
    %c0_3 = arith.constant 0 : index
    %c0_4 = arith.constant 0 : index
    %c0_5 = arith.constant 0 : index
    %4 = vector.load %arg2[%c0_3, %c0_4, %c0_5] : memref<9x8x128xbf16, #tpu.memory_space<vmem>>, vector<1x8x128xbf16>
    %5 = vector.shape_cast %4 : vector<1x8x128xbf16> to vector<8x128xbf16>
    %cst_6 = arith.constant dense<0.000000e+00> : vector<64x128xf32>
    %6 = tpu.matmul %3, %5, %cst_6 {dimension_numbers = #tpu.dot_dimension_numbers<[1], [0], [0], [1], [0, 0, 1, 1], [], []>} : vector<64x8xbf16>, vector<8x128xbf16>, vector<64x128xf32> -> vector<64x128xf32>
    %7 = arith.addf %0, %6 : vector<64x128xf32>
    %c0_7 = arith.constant 0 : index
    %c1 = arith.constant 1 : index
    %c0_8 = arith.constant 0 : index
    %c0_9 = arith.constant 0 : index
    %8 = vector.load %arg1[%c0_7, %c1, %c0_8, %c0_9] : memref<1x6x80x8xbf16, #tpu.memory_space<vmem>>, vector<1x1x64x8xbf16>
    %9 = vector.shape_cast %8 : vector<1x1x64x8xbf16> to vector<1x64x8xbf16>
    %10 = vector.shape_cast %9 : vector<1x64x8xbf16> to vector<64x8xbf16>
    %c1_10 = arith.constant 1 : index
    %c0_11 = arith.constant 0 : index
    %c0_12 = arith.constant 0 : index
    %11 = vector.load %arg2[%c1_10, %c0_11, %c0_12] : memref<9x8x128xbf16, #tpu.memory_space<vmem>>, vector<1x8x128xbf16>
    %12 = vector.shape_cast %11 : vector<1x8x128xbf16> to vector<8x128xbf16>
    %cst_13 = arith.constant dense<0.000000e+00> : vector<64x128xf32>
    %13 = tpu.matmul %10, %12, %cst_13 {dimension_numbers = #tpu.dot_dimension_numbers<[1], [0], [0], [1], [0, 0, 1, 1], [], []>} : vector<64x8xbf16>, vector<8x128xbf16>, vector<64x128xf32> -> vector<64x128xf32>
    %14 = arith.addf %7, %13 : vector<64x128xf32>
    %c0_14 = arith.constant 0 : index
    %c2 = arith.constant 2 : index
    %c0_15 = arith.constant 0 : index
    %c0_16 = arith.constant 0 : index
    %15 = vector.load %arg1[%c0_14, %c2, %c0_15, %c0_16] : memref<1x6x80x8xbf16, #tpu.memory_space<vmem>>, vector<1x1x64x8xbf16>
    %16 = vector.shape_cast %15 : vector<1x1x64x8xbf16> to vector<1x64x8xbf16>
    %17 = vector.shape_cast %16 : vector<1x64x8xbf16> to vector<64x8xbf16>
    %c2_17 = arith.constant 2 : index
    %c0_18 = arith.constant 0 : index
    %c0_19 = arith.constant 0 : index
    %18 = vector.load %arg2[%c2_17, %c0_18, %c0_19] : memref<9x8x128xbf16, #tpu.memory_space<vmem>>, vector<1x8x128xbf16>
    %19 = vector.shape_cast %18 : vector<1x8x128xbf16> to vector<8x128xbf16>
    %cst_20 = arith.constant dense<0.000000e+00> : vector<64x128xf32>
    %20 = tpu.matmul %17, %19, %cst_20 {dimension_numbers = #tpu.dot_dimension_numbers<[1], [0], [0], [1], [0, 0, 1, 1], [], []>} : vector<64x8xbf16>, vector<8x128xbf16>, vector<64x128xf32> -> vector<64x128xf32>
    %21 = arith.addf %14, %20 : vector<64x128xf32>
    %c0_21 = arith.constant 0 : index
    %c3 = arith.constant 3 : index
    %c0_22 = arith.constant 0 : index
    %c0_23 = arith.constant 0 : index
    %22 = vector.load %arg1[%c0_21, %c3, %c0_22, %c0_23] : memref<1x6x80x8xbf16, #tpu.memory_space<vmem>>, vector<1x1x64x8xbf16>
    %23 = vector.shape_cast %22 : vector<1x1x64x8xbf16> to vector<1x64x8xbf16>
    %24 = vector.shape_cast %23 : vector<1x64x8xbf16> to vector<64x8xbf16>
    %c3_24 = arith.constant 3 : index
    %c0_25 = arith.constant 0 : index
    %c0_26 = arith.constant 0 : index
    %25 = vector.load %arg2[%c3_24, %c0_25, %c0_26] : memref<9x8x128xbf16, #tpu.memory_space<vmem>>, vector<1x8x128xbf16>
    %26 = vector.shape_cast %25 : vector<1x8x128xbf16> to vector<8x128xbf16>
    %cst_27 = arith.constant dense<0.000000e+00> : vector<64x128xf32>
    %27 = tpu.matmul %24, %26, %cst_27 {dimension_numbers = #tpu.dot_dimension_numbers<[1], [0], [0], [1], [0, 0, 1, 1], [], []>} : vector<64x8xbf16>, vector<8x128xbf16>, vector<64x128xf32> -> vector<64x128xf32>
    %28 = arith.addf %21, %27 : vector<64x128xf32>
    %c0_28 = arith.constant 0 : index
    %c4 = arith.constant 4 : index
    %c0_29 = arith.constant 0 : index
    %c0_30 = arith.constant 0 : index
    %29 = vector.load %arg1[%c0_28, %c4, %c0_29, %c0_30] : memref<1x6x80x8xbf16, #tpu.memory_space<vmem>>, vector<1x1x64x8xbf16>
    %30 = vector.shape_cast %29 : vector<1x1x64x8xbf16> to vector<1x64x8xbf16>
    %31 = vector.shape_cast %30 : vector<1x64x8xbf16> to vector<64x8xbf16>
    %c4_31 = arith.constant 4 : index
    %c0_32 = arith.constant 0 : index
    %c0_33 = arith.constant 0 : index
    %32 = vector.load %arg2[%c4_31, %c0_32, %c0_33] : memref<9x8x128xbf16, #tpu.memory_space<vmem>>, vector<1x8x128xbf16>
    %33 = vector.shape_cast %32 : vector<1x8x128xbf16> to vector<8x128xbf16>
    %cst_34 = arith.constant dense<0.000000e+00> : vector<64x128xf32>
    %34 = tpu.matmul %31, %33, %cst_34 {dimension_numbers = #tpu.dot_dimension_numbers<[1], [0], [0], [1], [0, 0, 1, 1], [], []>} : vector<64x8xbf16>, vector<8x128xbf16>, vector<64x128xf32> -> vector<64x128xf32>
    %35 = arith.addf %28, %34 : vector<64x128xf32>
    %c0_35 = arith.constant 0 : index
    %c5 = arith.constant 5 : index
    %c0_36 = arith.constant 0 : index
    %c0_37 = arith.constant 0 : index
    %36 = vector.load %arg1[%c0_35, %c5, %c0_36, %c0_37] : memref<1x6x80x8xbf16, #tpu.memory_space<vmem>>, vector<1x1x64x8xbf16>
    %37 = vector.shape_cast %36 : vector<1x1x64x8xbf16> to vector<1x64x8xbf16>
    %38 = vector.shape_cast %37 : vector<1x64x8xbf16> to vector<64x8xbf16>
    %c5_38 = arith.constant 5 : index
    %c0_39 = arith.constant 0 : index
    %c0_40 = arith.constant 0 : index
    %39 = vector.load %arg2[%c5_38, %c0_39, %c0_40] : memref<9x8x128xbf16, #tpu.memory_space<vmem>>, vector<1x8x128xbf16>
    %40 = vector.shape_cast %39 : vector<1x8x128xbf16> to vector<8x128xbf16>
    %cst_41 = arith.constant dense<0.000000e+00> : vector<64x128xf32>
    %41 = tpu.matmul %38, %40, %cst_41 {dimension_numbers = #tpu.dot_dimension_numbers<[1], [0], [0], [1], [0, 0, 1, 1], [], []>} : vector<64x8xbf16>, vector<8x128xbf16>, vector<64x128xf32> -> vector<64x128xf32>
    %42 = arith.addf %35, %41 : vector<64x128xf32>
    %c0_42 = arith.constant 0 : index
    %c0_43 = arith.constant 0 : index
    %c16 = arith.constant 16 : index
    %c0_44 = arith.constant 0 : index
    %43 = vector.load %arg1[%c0_42, %c0_43, %c16, %c0_44] : memref<1x6x80x8xbf16, #tpu.memory_space<vmem>>, vector<1x1x64x8xbf16>
    %44 = vector.shape_cast %43 : vector<1x1x64x8xbf16> to vector<1x64x8xbf16>
    %45 = vector.shape_cast %44 : vector<1x64x8xbf16> to vector<64x8xbf16>
    %c6 = arith.constant 6 : index
    %c0_45 = arith.constant 0 : index
    %c0_46 = arith.constant 0 : index
    %46 = vector.load %arg2[%c6, %c0_45, %c0_46] : memref<9x8x128xbf16, #tpu.memory_space<vmem>>, vector<1x8x128xbf16>
    %47 = vector.shape_cast %46 : vector<1x8x128xbf16> to vector<8x128xbf16>
    %cst_47 = arith.constant dense<0.000000e+00> : vector<64x128xf32>
    %48 = tpu.matmul %45, %47, %cst_47 {dimension_numbers = #tpu.dot_dimension_numbers<[1], [0], [0], [1], [0, 0, 1, 1], [], []>} : vector<64x8xbf16>, vector<8x128xbf16>, vector<64x128xf32> -> vector<64x128xf32>
    %49 = arith.addf %42, %48 : vector<64x128xf32>
    %c0_48 = arith.constant 0 : index
    %c1_49 = arith.constant 1 : index
    %c16_50 = arith.constant 16 : index
    %c0_51 = arith.constant 0 : index
    %50 = vector.load %arg1[%c0_48, %c1_49, %c16_50, %c0_51] : memref<1x6x80x8xbf16, #tpu.memory_space<vmem>>, vector<1x1x64x8xbf16>
    %51 = vector.shape_cast %50 : vector<1x1x64x8xbf16> to vector<1x64x8xbf16>
    %52 = vector.shape_cast %51 : vector<1x64x8xbf16> to vector<64x8xbf16>
    %c7 = arith.constant 7 : index
    %c0_52 = arith.constant 0 : index
    %c0_53 = arith.constant 0 : index
    %53 = vector.load %arg2[%c7, %c0_52, %c0_53] : memref<9x8x128xbf16, #tpu.memory_space<vmem>>, vector<1x8x128xbf16>
    %54 = vector.shape_cast %53 : vector<1x8x128xbf16> to vector<8x128xbf16>
    %cst_54 = arith.constant dense<0.000000e+00> : vector<64x128xf32>
    %55 = tpu.matmul %52, %54, %cst_54 {dimension_numbers = #tpu.dot_dimension_numbers<[1], [0], [0], [1], [0, 0, 1, 1], [], []>} : vector<64x8xbf16>, vector<8x128xbf16>, vector<64x128xf32> -> vector<64x128xf32>
    %56 = arith.addf %49, %55 : vector<64x128xf32>
    %c0_55 = arith.constant 0 : index
    %c2_56 = arith.constant 2 : index
    %c16_57 = arith.constant 16 : index
    %c0_58 = arith.constant 0 : index
    %57 = vector.load %arg1[%c0_55, %c2_56, %c16_57, %c0_58] : memref<1x6x80x8xbf16, #tpu.memory_space<vmem>>, vector<1x1x64x8xbf16>
    %58 = vector.shape_cast %57 : vector<1x1x64x8xbf16> to vector<1x64x8xbf16>
    %59 = vector.shape_cast %58 : vector<1x64x8xbf16> to vector<64x8xbf16>
    %c8 = arith.constant 8 : index
    %c0_59 = arith.constant 0 : index
    %c0_60 = arith.constant 0 : index
    %60 = vector.load %arg2[%c8, %c0_59, %c0_60] : memref<9x8x128xbf16, #tpu.memory_space<vmem>>, vector<1x8x128xbf16>
    %61 = vector.shape_cast %60 : vector<1x8x128xbf16> to vector<8x128xbf16>
    %cst_61 = arith.constant dense<0.000000e+00> : vector<64x128xf32>
    %62 = tpu.matmul %59, %61, %cst_61 {dimension_numbers = #tpu.dot_dimension_numbers<[1], [0], [0], [1], [0, 0, 1, 1], [], []>} : vector<64x8xbf16>, vector<8x128xbf16>, vector<64x128xf32> -> vector<64x128xf32>
    %63 = arith.addf %56, %62 : vector<64x128xf32>
    %c0_62 = arith.constant 0 : index
    %c0_63 = arith.constant 0 : index
    %64 = vector.load %arg3[%c0_62, %c0_63] : memref<1x128xf32, #tpu.memory_space<vmem>>, vector<1x128xf32>
    %65 = vector.broadcast %64 : vector<1x128xf32> to vector<64x128xf32>
    %66 = arith.addf %63, %65 : vector<64x128xf32>
    %cst_64 = arith.constant 0.000000e+00 : f32
    %67 = vector.broadcast %cst_64 : f32 to vector<64x128xf32>
    %68 = arith.maximumf %66, %67 : vector<64x128xf32>
    %69 = arith.truncf %68 : vector<64x128xf32> to vector<64x128xbf16>
    %c0_65 = arith.constant 0 : index
    %c0_66 = arith.constant 0 : index
    %70 = vector.load %arg4[%c0_65, %c0_66] : memref<128x128xbf16, #tpu.memory_space<vmem>>, vector<128x128xbf16>
    %cst_67 = arith.constant dense<0.000000e+00> : vector<64x128xf32>
    %71 = tpu.matmul %69, %70, %cst_67 {dimension_numbers = #tpu.dot_dimension_numbers<[1], [0], [0], [1], [0, 0, 1, 1], [], []>} : vector<64x128xbf16>, vector<128x128xbf16>, vector<64x128xf32> -> vector<64x128xf32>
    %c0_68 = arith.constant 0 : index
    %c0_69 = arith.constant 0 : index
    %72 = vector.load %arg5[%c0_68, %c0_69] : memref<1x128xf32, #tpu.memory_space<vmem>>, vector<1x128xf32>
    %73 = vector.broadcast %72 : vector<1x128xf32> to vector<64x128xf32>
    %74 = arith.addf %71, %73 : vector<64x128xf32>
    %cst_70 = arith.constant 0.000000e+00 : f32
    %75 = vector.broadcast %cst_70 : f32 to vector<64x128xf32>
    %76 = arith.maximumf %74, %75 : vector<64x128xf32>
    %77 = arith.truncf %76 : vector<64x128xf32> to vector<64x128xbf16>
    %c0_71 = arith.constant 0 : index
    %c0_72 = arith.constant 0 : index
    %78 = vector.load %arg6[%c0_71, %c0_72] : memref<128x128xbf16, #tpu.memory_space<vmem>>, vector<128x128xbf16>
    %cst_73 = arith.constant dense<0.000000e+00> : vector<64x128xf32>
    %79 = tpu.matmul %77, %78, %cst_73 {dimension_numbers = #tpu.dot_dimension_numbers<[1], [0], [0], [1], [0, 0, 1, 1], [], []>} : vector<64x128xbf16>, vector<128x128xbf16>, vector<64x128xf32> -> vector<64x128xf32>
    %c0_74 = arith.constant 0 : index
    %c0_75 = arith.constant 0 : index
    %80 = vector.load %arg7[%c0_74, %c0_75] : memref<1x128xf32, #tpu.memory_space<vmem>>, vector<1x128xf32>
    %81 = vector.broadcast %80 : vector<1x128xf32> to vector<64x128xf32>
    %82 = arith.addf %79, %81 : vector<64x128xf32>
    %cst_76 = arith.constant 0.000000e+00 : f32
    %83 = vector.broadcast %cst_76 : f32 to vector<64x128xf32>
    %84 = arith.maximumf %82, %83 : vector<64x128xf32>
    %85 = vector.shape_cast %84 : vector<64x128xf32> to vector<1x4x16x128xf32>
    %86 = tpu.iota {dimensions = array<i32: 2>} : vector<1x4x16x128xi32>
    %c4_i32 = arith.constant 4 : i32
    %87 = vector.broadcast %c4_i32 : i32 to vector<1x4x16x128xi32>
    %88 = arith.cmpi slt, %86, %87 : vector<1x4x16x128xi32>
    %cst_77 = arith.constant 0.000000e+00 : f32
    %89 = vector.broadcast %cst_77 : f32 to vector<1x4x16x128xf32>
    %90 = arith.select %88, %85, %89 : vector<1x4x16x128xi1>, vector<1x4x16x128xf32>
    %91 = vector.shape_cast %90 : vector<1x4x16x128xf32> to vector<1x64x128xf32>
    %cst_78 = arith.constant dense<0.000000e+00> : vector<1x128xf32>
    %92 = vector.multi_reduction <add>, %91, %cst_78 [1] : vector<1x64x128xf32> to vector<1x128xf32>
    %cst_79 = arith.constant 6.250000e-02 : f32
    %93 = vector.broadcast %cst_79 : f32 to vector<1x128xf32>
    %94 = arith.mulf %92, %93 : vector<1x128xf32>
    %c0_80 = arith.constant 0 : index
    %c0_81 = arith.constant 0 : index
    %95 = vector.load %arg8[%c0_80, %c0_81] : memref<128x128xf32, #tpu.memory_space<vmem>>, vector<128x128xf32>
    %cst_82 = arith.constant dense<0.000000e+00> : vector<1x128xf32>
    %96 = tpu.matmul %94, %95, %cst_82 {dimension_numbers = #tpu.dot_dimension_numbers<[1], [0], [0], [1], [0, 0, 1, 1], [], []>} : vector<1x128xf32>, vector<128x128xf32>, vector<1x128xf32> -> vector<1x128xf32>
    %c0_83 = arith.constant 0 : index
    %c0_84 = arith.constant 0 : index
    %97 = vector.load %arg9[%c0_83, %c0_84] : memref<1x128xf32, #tpu.memory_space<vmem>>, vector<1x128xf32>
    %98 = arith.addf %96, %97 : vector<1x128xf32>
    %99 = vector.shape_cast %98 : vector<1x128xf32> to vector<1x1x128xf32>
    %c0_85 = arith.constant 0 : index
    %c0_86 = arith.constant 0 : index
    %c0_87 = arith.constant 0 : index
    %100 = vector.load %arg10[%c0_85, %c0_86, %c0_87] : memref<1x1x128xf32, #tpu.memory_space<vmem>>, vector<1x1x128xf32>
    tpu.vector_store %arg10[%c0_85, %c0_86, %c0_87], %99 {strides = array<i32>} : memref<1x1x128xf32, #tpu.memory_space<vmem>>, vector<1x1x128xf32>,
    return
  }
  func.func @transform_0(%arg0: i32) -> (i32, i32, i32, i32) {
    %c0_i32 = arith.constant 0 : i32
    %c0_i32_0 = arith.constant 0 : i32
    %c0_i32_1 = arith.constant 0 : i32
    %c0_i32_2 = arith.constant 0 : i32
    return %arg0, %c0_i32, %c0_i32_0, %c0_i32_1 : i32, i32, i32, i32
  }
  func.func @transform_1(%arg0: i32) -> (i32, i32, i32) {
    %c0_i32 = arith.constant 0 : i32
    %c0_i32_0 = arith.constant 0 : i32
    %c0_i32_1 = arith.constant 0 : i32
    %c0_i32_2 = arith.constant 0 : i32
    return %c0_i32, %c0_i32_0, %c0_i32_1 : i32, i32, i32
  }
  func.func @transform_2(%arg0: i32) -> (i32, i32) {
    %c0_i32 = arith.constant 0 : i32
    %c0_i32_0 = arith.constant 0 : i32
    %c0_i32_1 = arith.constant 0 : i32
    return %c0_i32, %c0_i32_0 : i32, i32
  }
  func.func @transform_3(%arg0: i32) -> (i32, i32) {
    %c0_i32 = arith.constant 0 : i32
    %c0_i32_0 = arith.constant 0 : i32
    %c0_i32_1 = arith.constant 0 : i32
    return %c0_i32, %c0_i32_0 : i32, i32
  }
  func.func @transform_4(%arg0: i32) -> (i32, i32) {
    %c0_i32 = arith.constant 0 : i32
    %c0_i32_0 = arith.constant 0 : i32
    %c0_i32_1 = arith.constant 0 : i32
    return %c0_i32, %c0_i32_0 : i32, i32
  }
  func.func @transform_5(%arg0: i32) -> (i32, i32) {
    %c0_i32 = arith.constant 0 : i32
    %c0_i32_0 = arith.constant 0 : i32
    %c0_i32_1 = arith.constant 0 : i32
    return %c0_i32, %c0_i32_0 : i32, i32
  }
  func.func @transform_6(%arg0: i32) -> (i32, i32) {
    %c0_i32 = arith.constant 0 : i32
    %c0_i32_0 = arith.constant 0 : i32
    %c0_i32_1 = arith.constant 0 : i32
    return %c0_i32, %c0_i32_0 : i32, i32
  }
  func.func @transform_7(%arg0: i32) -> (i32, i32) {
    %c0_i32 = arith.constant 0 : i32
    %c0_i32_0 = arith.constant 0 : i32
    %c0_i32_1 = arith.constant 0 : i32
    return %c0_i32, %c0_i32_0 : i32, i32
  }
  func.func @transform_8(%arg0: i32) -> (i32, i32) {
    %c0_i32 = arith.constant 0 : i32
    %c0_i32_0 = arith.constant 0 : i32
    %c0_i32_1 = arith.constant 0 : i32
    return %c0_i32, %c0_i32_0 : i32, i32
  }
  func.func @transform_9(%arg0: i32) -> (i32, i32, i32) {
    %c0_i32 = arith.constant 0 : i32
    %c0_i32_0 = arith.constant 0 : i32
    %c0_i32_1 = arith.constant 0 : i32
    return %arg0, %c0_i32, %c0_i32_0 : i32, i32, i32
  }
}

</mosaic_0001>

<bundles_post_ra>
// kernel: nin_forward.2
= control target key start
LH: loop header
LB: loop body
LE: loop exit
PB: predicated region body
PF: predicated region fallthrough
CT: control target
= control target key end

     0   :  { %s3430_s24 = smov 0   ;;  %s3747_s0 = inlined_call_operand.vmem [shape: bf16[2,6,144,4], index: 0, kind: input, shape index: {}]   ;;  %s3748_s1 = inlined_call_operand.vmem [shape: bf16[9,4,128], index: 1, kind: input, shape index: {}]   ;;  %s3749_s2 = inlined_call_operand.vmem [shape: f32[1,128], index: 2, kind: input, shape index: {}]   ;;  %s3750_s3 = inlined_call_operand.vmem [shape: bf16[128,128], index: 3, kind: input, shape index: {}]   ;;  %s3751_s4 = inlined_call_operand.vmem [shape: f32[1,128], index: 4, kind: input, shape index: {}]   ;;  %s3752_s5 = inlined_call_operand.vmem [shape: bf16[128,128], index: 5, kind: input, shape index: {}]   ;;  %s3753_s6 = inlined_call_operand.vmem [shape: f32[1,128], index: 6, kind: input, shape index: {}]   ;;  %s3754_s7 = inlined_call_operand.vmem [shape: bf16[2,8,8,8], index: 7, kind: output, shape index: {}]  }
   0x1 LB: > { %s2515_s25 = sadd.s32 4294967295, %s3388_s24   ;;  %p2519_p0 = scmp.ge.s32.totalorder %s3388_s24, 1  ;;  %s3388_s24 = sphi %s3430_s24, %s17_s24  }
   0x2   : > { %p237_p1 = scmp.lt.s32.totalorder %s3388_s24, 3 }
   0x4   : > { %p238_p2 = pnand %p2519_p0, %p237_p1 }
   0x5   : > { %vm381_vm0 = vcmask (!%p238_p2), 1041408   ;;  %v2621_v0 = vld [vmem:[%s3748_s1 + $0x6] sm:$0x3] (!%p238_p2)  ;;  %p269_p3 = scmp.lt.s32.totalorder (!%p238_p2), %s2515_s25, 1  ;;  %v2654_v2 = vld [vmem:[%s3748_s1 + $0x8] sm:$0x3] (!%p238_p2) }
   0x6   : > { %241 = sbr.rel (%p238_p2) target bundleno = 869 (0x365), region = 48  ;;  %3279 = vmatprep.subr.msk.bf16.mxu0 (!%p238_p2), %vm381_vm0, %v2621_v0  ;;  %v929_v1 = vsel (!%p238_p2), %vm381_vm0, %v2621_v0, 0  ;;  %v2539_v3 = vld [vmem:[%s3748_s1 + $0x2] sm:$0x3] (!%p238_p2)  ;;  %v296_v5 = vld [vmem:[%s3748_s1] sm:$0x3] (!%p238_p2) }
   0x7   : > { %2977 = vmatpush3.bf16.msra.mxu0 (!%p238_p2), %v929_v1  ;;  %3276 = vmatprep.subr.msk.bf16.mxu1 (!%p238_p2), %vm381_vm0, %v2539_v3  ;;  %v383_v4 = vsel (!%p238_p2), %vm381_vm0, %v2539_v3, 0  ;;  %vm356_vm1 = vcmask (!%p238_p2), 31744   ;;  %v2687_v7 = vld [vmem:[%s3748_s1 + $0xa] sm:$0x3] (!%p238_p2)  ;;  %v1128_v9 = vsel (!%p238_p2), %vm381_vm0, %v2654_v2, 0  ;;  %v547_v15 = vsel (!%p238_p2), %vm381_vm0, %v296_v5, 0 }
   0x8   : > { %3280 = vmatprep.subr.msk.bf16.mxu0 (!%p238_p2), %vm381_vm0, %v2654_v2  ;;  %2923 = vmatpush3.bf16.msra.mxu1 (!%p238_p2), %v383_v4  ;;  %v2588_v16 = vld [vmem:[%s3748_s1 + $0x4] sm:$0x3] (!%p238_p2)  ;;  %v1327_v29 = vsel (!%p238_p2), %vm381_vm0, %v2687_v7, 0  ;;  %v2704_v31 = vld [vmem:[%s3748_s1 + $0xc] sm:$0x3] (!%p238_p2)  ;;  %vm2451_vm2 = vcmask (!%p238_p2), 60416  }
   0x9   : > { %3277 = vmatprep.subr.msk.bf16.mxu1 (!%p238_p2), %vm381_vm0, %v296_v5  ;;  %v730_v36 = vsel (!%p238_p2), %vm381_vm0, %v2588_v16, 0  ;;  %v1525_v48 = vsel (!%p238_p2), %vm381_vm0, %v2704_v31, 0  ;;  %v2737_v50 = vld [vmem:[%s3748_s1 + $0xe] sm:$0x3] (!%p238_p2)  ;;  %v2770_v3 = vld [vmem:[%s3748_s1 + $0x10] sm:$0x3] (!%p238_p2) }
   0xa   : > { %v1723_v2 = vsel (!%p238_p2), %vm381_vm0, %v2737_v50, 0 }
   0xd   : > { %s3756_s25 = smov (!%p269_p3, %s2515_s25), 1 }
   0xe   : > { %s3285_s11 = smul.u32 432, %s3756_s25  ;;  %s2808_s21 = sshll.u32 %s3756_s25, 5 }
   0xf   : > { %s3726_s26 = scalar_lea.vmem %s3754_s7, %s2808_s21 }
  0x10   : > { %s3462_s14 = scalar_lea.vmem %s3747_s0, %s3285_s11 }
  0x11   : > { %v3294_v6 = vld [vmem:[%s3462_s14 + $0xd8] sm:$0xff]   ;;  %v3295_v8 = vld [vmem:[%s3462_s14 + $0xe0] sm:$0xff]   ;;  %v3296_v10 = vld [vmem:[%s3462_s14 + $0xe8] sm:$0xff]  }
  0x12   : > { %2978 = vmatprep.mubr.msk.bf16.mxu0 %vm356_vm1, %v3294_v6  ;;  %v3297_v11 = vld [vmem:[%s3462_s14 + $0xf0] sm:$0xff]   ;;  %v3298_v12 = vld [vmem:[%s3462_s14 + $0xf8] sm:$0xff]   ;;  %v3302_v13 = vld [vmem:[%s3462_s14 + $0x48] sm:$0xff]  }
  0x13   : > { %2979 = vmatmul.mubr.msk.bf16.vlgmr.msra.gmra.mrb[0].mxu0 %vm356_vm1, %v3295_v8  ;;  %v3303_v14 = vld [vmem:[%s3462_s14 + $0x50] sm:$0xff]   ;;  %2924 = vmatprep.mubr.msk.bf16.mxu1 %vm356_vm1, %v3302_v13  ;;  %v3306_v17 = vld [vmem:[%s3462_s14 + $0x58] sm:$0xff]   ;;  %v3299_v18 = vld [vmem:[%s3462_s14 + $0x100] sm:$0xff]  }
  0x14   : > { %2995 = vmatpush3.bf16.msra.mxu0 %v1128_v9  ;;  %2982 = vmatprep.mubr.msk.bf16.mxu0 %vm356_vm1, %v3296_v10  ;;  %v3300_v19 = vld [vmem:[%s3462_s14 + $0x108] sm:$0xff]   ;;  %v3307_v20 = vld [vmem:[%s3462_s14 + $0x60] sm:$0xff]   ;;  %v3301_v22 = vld [vmem:[%s3462_s14 + $0x110] sm:$0xff]  }
  0x15   : > { %3281 = vmatprep.subr.msk.bf16.mxu0 %vm381_vm0, %v2687_v7  ;;  %2925 = vmatmul.mubr.msk.bf16.vlgmr.msra.gmra.mrb[0].mxu1 %vm356_vm1, %v3303_v14  ;;  %v3310_v21 = vld [vmem:[%s3462_s14 + $0x68] sm:$0xff]   ;;  %v3304_v23 = vld [vmem:[%s3462_s14 + $0x120] sm:$0xff]   ;;  %v3311_v24 = vld [vmem:[%s3462_s14 + $0x70] sm:$0xff]  }
  0x16   : > { %2941 = vmatpush3.bf16.msra.mxu1 %v547_v15  ;;  %2928 = vmatprep.mubr.msk.bf16.mxu1 %vm356_vm1, %v3306_v17  ;;  %v3314_v25 = vld [vmem:[%s3462_s14 + $0x78] sm:$0xff]   ;;  %v3305_v26 = vld [vmem:[%s3462_s14 + $0x128] sm:$0xff]   ;;  %v3315_v27 = vld [vmem:[%s3462_s14 + $0x80] sm:$0xff]  }
  0x17   : > { %3278 = vmatprep.subr.msk.bf16.mxu1 %vm381_vm0, %v2588_v16  ;;  %v3308_v28 = vld [vmem:[%s3462_s14 + $0x130] sm:$0xff]   ;;  %v3318_v30 = vld [vmem:[%s3462_s14] sm:$0xff]   ;;  %v3309_v32 = vld [vmem:[%s3462_s14 + $0x138] sm:$0xff]  }
  0x18   : > { %v3312_v33 = vld [vmem:[%s3462_s14 + $0x140] sm:$0xff]   ;;  %v3319_v34 = vld [vmem:[%s3462_s14 + $0x8] sm:$0xff]   ;;  %v3322_v35 = vld [vmem:[%s3462_s14 + $0x10] sm:$0xff]  }
  0x19   : > { %v3313_v37 = vld [vmem:[%s3462_s14 + $0x148] sm:$0xff]   ;;  %v3316_v38 = vld [vmem:[%s3462_s14 + $0x150] sm:$0xff]   ;;  %v3323_v39 = vld [vmem:[%s3462_s14 + $0x18] sm:$0xff]  }
  0x1a   : > { %v3326_v40 = vld [vmem:[%s3462_s14 + $0x20] sm:$0xff]   ;;  %v3317_v41 = vld [vmem:[%s3462_s14 + $0x158] sm:$0xff]   ;;  %v3320_v42 = vld [vmem:[%s3462_s14 + $0x168] sm:$0xff]  }
  0x1b   : > { %2983 = vmatmul.mubr.msk.bf16.gmra.mrb[4].mxu0 %vm356_vm1, %v3297_v11  ;;  %v3327_v43 = vld [vmem:[%s3462_s14 + $0x28] sm:$0xff]   ;;  %v3330_v44 = vld [vmem:[%s3462_s14 + $0x30] sm:$0xff]   ;;  %v3331_v46 = vld [vmem:[%s3462_s14 + $0x38] sm:$0xff]  }
  0x1c   : > { %2986 = vmatprep.mubr.msk.bf16.mxu0 %vm356_vm1, %v3298_v12  ;;  %v3321_v45 = vld [vmem:[%s3462_s14 + $0x170] sm:$0xff]   ;;  %v3324_v47 = vld [vmem:[%s3462_s14 + $0x178] sm:$0xff]   ;;  %v3325_v51 = vld [vmem:[%s3462_s14 + $0x180] sm:$0xff]   ;;  %v1921_v12 = vsel %vm381_vm0, %v2770_v3, 0 }
  0x1d   : > { %2929 = vmatmul.mubr.msk.bf16.gmra.mrb[4].mxu1 %vm356_vm1, %v3307_v20  ;;  %v3334_v49 = vld [vmem:[%s3462_s14 + $0x90] sm:$0xff]   ;;  %v3328_v52 = vld [vmem:[%s3462_s14 + $0x188] sm:$0xff]   ;;  %v3335_v53 = vld [vmem:[%s3462_s14 + $0x98] sm:$0xff]  }
  0x1e   : > { %2932 = vmatprep.mubr.msk.bf16.mxu1 %vm356_vm1, %v3310_v21  ;;  %v3338_v54 = vld [vmem:[%s3462_s14 + $0xa0] sm:$0xff]   ;;  %v3329_v55 = vld [vmem:[%s3462_s14 + $0x190] sm:$0xff]   ;;  %v3339_v56 = vld [vmem:[%s3462_s14 + $0xa8] sm:$0xff]  }
  0x1f   : > { %v3332_v57 = vld [vmem:[%s3462_s14 + $0x198] sm:$0xff]   ;;  %v3342_v58 = vld [vmem:[%s3462_s14 + $0xb0] sm:$0xff]   ;;  %v3333_v59 = vld [vmem:[%s3462_s14 + $0x1a0] sm:$0xff]  }
  0x20   : > { %v3343_v60 = vld [vmem:[%s3462_s14 + $0xb8] sm:$0xff]   ;;  %v3336_v61 = vld [vmem:[%s3462_s14 + $0x8] sm:$0xff]   ;;  %v3346_v62 = vld [vmem:[%s3462_s14 + $0xc0] sm:$0xff]  }
  0x21   : > { %v3337_v63 = vld [vmem:[%s3462_s14 + $0x10] sm:$0xff]   ;;  %v3347_v0 = vld [vmem:[%s3462_s14 + $0xc8] sm:$0xff]   ;;  %v3340_v1 = vld [vmem:[%s3462_s14 + $0x18] sm:$0xff]  }
  0x22   : > { %v3341_v4 = vld [vmem:[%s3462_s14 + $0x20] sm:$0xff]   ;;  %v3344_v5 = vld [vmem:[%s3462_s14 + $0x28] sm:$0xff]   ;;  %v3345_v6 = vld [vmem:[%s3462_s14 + $0x30] sm:$0xff]  }
  0x23   : > { %2987 = vmatmul.mubr.msk.bf16.gmra.mrb[8].mxu0 %vm356_vm1, %v3299_v18  ;;  %v3348_v7 = vld [vmem:[%s3462_s14 + $0x38] sm:$0xff]   ;;  %v3349_v8 = vld [vmem:[%s3462_s14 + $0x40] sm:$0xff]   ;;  %v3350_v9 = vld [vmem:[%s3462_s14 + $0x50] sm:$0xff]  }
  0x24   : > { %2990 = vmatprep.mubr.msk.bf16.mxu0 %vm356_vm1, %v3300_v19  ;;  %v3351_v10 = vld [vmem:[%s3462_s14 + $0x58] sm:$0xff]   ;;  %v3352_v11 = vld [vmem:[%s3462_s14 + $0x60] sm:$0xff]   ;;  %v3353_v13 = vld [vmem:[%s3462_s14 + $0x68] sm:$0xff]  }
  0x25   : > { %2933 = vmatmul.mubr.msk.bf16.gmra.mrb[8].mxu1 %vm356_vm1, %v3311_v24  ;;  %v3354_v14 = vld [vmem:[%s3462_s14 + $0x70] sm:$0xff]   ;;  %v3355_v15 = vld [vmem:[%s3462_s14 + $0x78] sm:$0xff]   ;;  %v3356_v16 = vld [vmem:[%s3462_s14 + $0x80] sm:$0xff]  }
  0x26   : > { %2936 = vmatprep.mubr.msk.bf16.mxu1 %vm356_vm1, %v3314_v25  ;;  %v3357_v17 = vld [vmem:[%s3462_s14 + $0x88] sm:$0xff]   ;;  %v3358_v18 = vld [vmem:[%s3462_s14 + $0x98] sm:$0xff]   ;;  %v3359_v19 = vld [vmem:[%s3462_s14 + $0xa0] sm:$0xff]  }
  0x27   : > { %v3360_v20 = vld [vmem:[%s3462_s14 + $0xa8] sm:$0xff]   ;;  %v3361_v21 = vld [vmem:[%s3462_s14 + $0xb0] sm:$0xff]  }
  0x28   : > { %v3364_v24 = vld [vmem:[%s3462_s14 + $0xc8] sm:$0xff]   ;;  %v3365_v25 = vld [vmem:[%s3462_s14 + $0xd0] sm:$0xff]  }
  0x2b   : > { %2991 = vmatmul.mubr.msk.bf16.gmra.mrb[12].mxu0 %vm356_vm1, %v3301_v22  ;;  %v3362_v22 = vld [vmem:[%s3462_s14 + $0xb8] sm:$0xff]  }
  0x2c   : > { %2996 = vmatprep.mubr.msk.bf16.mxu0 %vm356_vm1, %v3304_v23  ;;  %v3363_v23 = vld [vmem:[%s3462_s14 + $0xc0] sm:$0xff]  }
  0x2d   : > { %2937 = vmatmul.mubr.msk.bf16.gmra.mrb[12].mxu1 %vm356_vm1, %v3315_v27  ;;  %v3367_v27 = vld [vmem:[%s3750_s3 + $0x8] sm:$0xff]  }
  0x2e   : > { %2942 = vmatprep.mubr.msk.bf16.mxu1 %vm356_vm1, %v3318_v30  ;;  %v3370_v30 = vld [vmem:[%s3750_s3 + $0x20] sm:$0xff]  }
  0x33   : > { %2997 = vmatmul.mubr.msk.bf16.vlgmr.msra.gmra.mrb[0].mxu0 %vm356_vm1, %v3305_v26  ;;  %v3366_v26 = vld [vmem:[%s3750_s3] sm:$0xff]  }
  0x34   : > { %3013 = vmatpush3.bf16.msra.mxu0 %v1327_v29  ;;  %3000 = vmatprep.mubr.msk.bf16.mxu0 %vm356_vm1, %v3308_v28  ;;  %v3368_v28 = vld [vmem:[%s3750_s3 + $0x10] sm:$0xff]   ;;  %v3369_v29 = vld [vmem:[%s3750_s3 + $0x18] sm:$0xff]  }
  0x35   : > { %3282 = vmatprep.subr.msk.bf16.mxu0 %vm381_vm0, %v2704_v31  ;;  %2943 = vmatmul.mubr.msk.bf16.vlgmr.msra.gmra.mrb[0].mxu1 %vm356_vm1, %v3319_v34  ;;  %v3371_v31 = vld [vmem:[%s3750_s3 + $0x28] sm:$0xff]   ;;  %v3374_v34 = vld [vmem:[%s3752_s5] sm:$0xff]  }
  0x36   : > { %2946 = vmatprep.mubr.msk.bf16.mxu1 %vm356_vm1, %v3322_v35  ;;  %2959 = vmatpush3.bf16.msra.mxu1 %v730_v36 }
  0x37   : > { %3084 = vmatprep.subr.bf16.mxu1 %v3366_v26 }
  0x3b   : > { %3001 = vmatmul.mubr.msk.bf16.gmra.mrb[4].mxu0 %vm356_vm1, %v3309_v32  ;;  %v3372_v32 = vld [vmem:[%s3750_s3 + $0x30] sm:$0xff]  }
  0x3c   : > { %3004 = vmatprep.mubr.msk.bf16.mxu0 %vm356_vm1, %v3312_v33  ;;  %v3373_v33 = vld [vmem:[%s3750_s3 + $0x38] sm:$0xff]  }
  0x3d   : > { %2947 = vmatmul.mubr.msk.bf16.gmra.mrb[4].mxu1 %vm356_vm1, %v3323_v39 }
  0x3e   : > { %2950 = vmatprep.mubr.msk.bf16.mxu1 %vm356_vm1, %v3326_v40 }
  0x43   : > { %3005 = vmatmul.mubr.msk.bf16.gmra.mrb[8].mxu0 %vm356_vm1, %v3313_v37 }
  0x44   : > { %3008 = vmatprep.mubr.msk.bf16.mxu0 %vm356_vm1, %v3316_v38 }
  0x45   : > { %2951 = vmatmul.mubr.msk.bf16.gmra.mrb[8].mxu1 %vm356_vm1, %v3327_v43 }
  0x46   : > { %2954 = vmatprep.mubr.msk.bf16.mxu1 %vm356_vm1, %v3330_v44 }
  0x4b   : > { %3009 = vmatmul.mubr.msk.bf16.gmra.mrb[12].mxu0 %vm356_vm1, %v3317_v41 }
  0x4c   : > { %3014 = vmatprep.mubr.msk.bf16.mxu0 %vm356_vm1, %v3320_v42 }
  0x4d   : > { %2955 = vmatmul.mubr.msk.bf16.gmra.mrb[12].mxu1 %vm356_vm1, %v3331_v46 }
  0x4e   : > { %2960 = vmatprep.mubr.msk.bf16.mxu1 %vm356_vm1, %v3334_v49 }
  0x53   : > { %3015 = vmatmul.mubr.msk.bf16.vlgmr.msra.gmra.mrb[0].mxu0 %vm356_vm1, %v3321_v45 }
  0x54   : > { %3031 = vmatpush3.bf16.msra.mxu0 %v1525_v48  ;;  %3018 = vmatprep.mubr.msk.bf16.mxu0 %vm356_vm1, %v3324_v47 }
  0x55   : > { %3283 = vmatprep.subr.msk.bf16.mxu0 %vm381_vm0, %v2737_v50  ;;  %2961 = vmatmul.mubr.msk.bf16.vlgmr.msra.gmra.mrb[0].mxu1 %vm356_vm1, %v3335_v53 }
  0x56   : > { %2964 = vmatprep.mubr.msk.bf16.mxu1 %vm356_vm1, %v3338_v54  ;;  %3085 = vmatpush3.bf16.msra.mxu1 %v3366_v26 }
  0x57   : > { %3086 = vmatprep.subr.bf16.mxu1 %v3367_v27 }
  0x5a   : > { %3087 = vmatpush3.bf16.msra.mxu1 %v3367_v27 }
  0x5b   : > { %3019 = vmatmul.mubr.msk.bf16.gmra.mrb[4].mxu0 %vm356_vm1, %v3325_v51  ;;  %3088 = vmatprep.subr.bf16.mxu1 %v3368_v28 }
  0x5c   : > { %3022 = vmatprep.mubr.msk.bf16.mxu0 %vm356_vm1, %v3328_v52  ;;  %v3673_v52 = vld [vmem:[%s3749_s2] ss:$0 sm:$0xff] }
  0x5d   : > { %2965 = vmatmul.mubr.msk.bf16.gmra.mrb[4].mxu1 %vm356_vm1, %v3339_v56 }
  0x5e   : > { %2968 = vmatprep.mubr.msk.bf16.mxu1 %vm356_vm1, %v3342_v58  ;;  %3089 = vmatpush3.bf16.msra.mxu1 %v3368_v28 }
  0x5f   : > { %3090 = vmatprep.subr.bf16.mxu1 %v3369_v29 }
  0x62   : > { %3091 = vmatpush3.bf16.msra.mxu1 %v3369_v29 }
  0x63   : > { %3023 = vmatmul.mubr.msk.bf16.gmra.mrb[8].mxu0 %vm356_vm1, %v3329_v55  ;;  %3092 = vmatprep.subr.bf16.mxu1 %v3370_v30 }
  0x64   : > { %3026 = vmatprep.mubr.msk.bf16.mxu0 %vm356_vm1, %v3332_v57 }
  0x65   : > { %2969 = vmatmul.mubr.msk.bf16.gmra.mrb[8].mxu1 %vm356_vm1, %v3343_v60 }
  0x66   : > { %2972 = vmatprep.mubr.msk.bf16.mxu1 %vm356_vm1, %v3346_v62  ;;  %3093 = vmatpush3.bf16.msra.mxu1 %v3370_v30 }
  0x67   : > { %3094 = vmatprep.subr.bf16.mxu1 %v3371_v31 }
  0x6a   : > { %3095 = vmatpush3.bf16.msra.mxu1 %v3371_v31 }
  0x6b   : > { %3027 = vmatmul.mubr.msk.bf16.gmra.mrb[12].mxu0 %vm356_vm1, %v3333_v59  ;;  %3096 = vmatprep.subr.bf16.mxu1 %v3372_v32 }
  0x6c   : > { %3032 = vmatprep.mubr.msk.bf16.mxu0 %vm356_vm1, %v3336_v61 }
  0x6d   : > { %2973 = vmatmul.mubr.msk.bf16.gmra.mrb[12].mxu1 %vm356_vm1, %v3347_v0 }
  0x6e   : > { %3097 = vmatpush3.bf16.msra.mxu1 %v3372_v32 }
  0x6f   : > { %3098 = vmatprep.subr.bf16.mxu1 %v3373_v33 }
  0x72   : > { %3099 = vmatpush3.bf16.msra.mxu1 %v3373_v33 }
  0x73   : > { %3033 = vmatmul.mubr.msk.bf16.vlgmr.msra.gmra.mrb[0].mxu0 %vm356_vm1, %v3337_v63  ;;  %3116 = vmatprep.subr.bf16.mxu1 %v3374_v34 }
  0x74   : > { %3049 = vmatpush3.bf16.msra.mxu0 %v1723_v2  ;;  %3036 = vmatprep.mubr.msk.bf16.mxu0 %vm356_vm1, %v3340_v1 }
  0x75   : > { %3284 = vmatprep.subr.msk.bf16.mxu0 %vm381_vm0, %v2770_v3 }
  0x7b   : > { %3037 = vmatmul.mubr.msk.bf16.gmra.mrb[4].mxu0 %vm356_vm1, %v3341_v4 }
  0x7c   : > { %3040 = vmatprep.mubr.msk.bf16.mxu0 %vm356_vm1, %v3344_v5 }
  0x83   : > { %3041 = vmatmul.mubr.msk.bf16.gmra.mrb[8].mxu0 %vm356_vm1, %v3345_v6 }
  0x84   : > { %3044 = vmatprep.mubr.msk.bf16.mxu0 %vm356_vm1, %v3348_v7 }
  0x8b   : > { %3045 = vmatmul.mubr.msk.bf16.gmra.mrb[12].mxu0 %vm356_vm1, %v3349_v8 }
  0x8c   : > { %3050 = vmatprep.mubr.msk.bf16.mxu0 %vm356_vm1, %v3350_v9 }
  0x93   : > { %3051 = vmatmul.mubr.msk.bf16.vlgmr.msra.gmra.mrb[0].mxu0 %vm356_vm1, %v3351_v10 }
  0x94   : > { %3067 = vmatpush3.bf16.msra.mxu0 %v1921_v12  ;;  %3054 = vmatprep.mubr.msk.bf16.mxu0 %vm356_vm1, %v3352_v11 }
  0x9b   : > { %3055 = vmatmul.mubr.msk.bf16.gmra.mrb[4].mxu0 %vm356_vm1, %v3353_v13 }
  0x9c   : > { %3058 = vmatprep.mubr.msk.bf16.mxu0 %vm356_vm1, %v3354_v14  ;;  %v3375_v14 = vld [vmem:[%s3752_s5 + $0x8] sm:$0xff]  }
  0xa3   : > { %3059 = vmatmul.mubr.msk.bf16.gmra.mrb[8].mxu0 %vm356_vm1, %v3355_v15 }
  0xa4   : > { %3062 = vmatprep.mubr.msk.bf16.mxu0 %vm356_vm1, %v3356_v16 }
  0xab   : > { %3063 = vmatmul.mubr.msk.bf16.gmra.mrb[12].mxu0 %vm356_vm1, %v3357_v17 }
  0xac   : > { %3068 = vmatprep.mubr.msk.bf16.mxu0 %vm356_vm1, %v3358_v18 }
  0xb3   : > { %3069 = vmatmul.mubr.msk.bf16.vlgmr.msra.gmra.mrb[0].mxu0 %vm356_vm1, %v3359_v19 }
  0xb4   : > { %3072 = vmatprep.mubr.msk.bf16.mxu0 %vm356_vm1, %v3360_v20 }
  0xbb   : > { %3073 = vmatmul.mubr.msk.bf16.gmra.mrb[4].mxu0 %vm356_vm1, %v3361_v21  ;;  %v3376_v21 = vld [vmem:[%s3752_s5 + $0x10] sm:$0xff]  }
  0xbc   : > { %3076 = vmatprep.mubr.msk.bf16.mxu0 %vm356_vm1, %v3362_v22 }
  0xc3   : > { %3077 = vmatmul.mubr.msk.bf16.gmra.mrb[8].mxu0 %vm356_vm1, %v3363_v23 }
  0xc4   : > { %3080 = vmatprep.mubr.msk.bf16.mxu0 %vm356_vm1, %v3364_v24 }
  0xcb   : > { %3081 = vmatmul.mubr.msk.bf16.gmra.mrb[12].mxu0 %vm356_vm1, %v3365_v25 }
 0x128   : > { %v2962_v35 = vpop.f32.mrb[0].mxu1 }
 0x129   : > { %v766_v36 = vpop.f32.mrb[1].mxu1 }
 0x12a   : > { %v2963_v37 = vpop.f32.mrb[2].mxu1 }
 0x12b   : > { %v769_v38 = vpop.f32.mrb[3].mxu1 }
 0x130   : > { %v2966_v39 = vpop.f32.mrb[4].mxu1 }
 0x131   : > { %v782_v40 = vpop.f32.mrb[5].mxu1 }
 0x132   : > { %v2967_v41 = vpop.f32.mrb[6].mxu1 }
 0x133   : > { %v785_v42 = vpop.f32.mrb[7].mxu1 }
 0x138   : > { %v2970_v43 = vpop.f32.mrb[8].mxu1 }
 0x139   : > { %v798_v44 = vpop.f32.mrb[9].mxu1 }
 0x13a   : > { %v2971_v45 = vpop.f32.mrb[10].mxu1 }
 0x13b   : > { %v801_v46 = vpop.f32.mrb[11].mxu1 }
 0x140   : > { %v3662_v47 = vpop.f32.mrb[12].mxu1 }
 0x141   : > { %v3664_v48 = vpop.f32.mrb[13].mxu1 }
 0x142   : > { %v3666_v49 = vpop.f32.mrb[14].mxu1 }
 0x143   : > { %v3668_v50 = vpop.f32.mrb[15].mxu1 }
 0x186   : > { %v3070_v51 = vpop.f32.mrb[0].mxu0 }
 0x187   : > { %v3148_v53 = vadd.f32 %v3070_v51, %v2962_v35  ;;  %v1957_v54 = vpop.f32.mrb[1].mxu0 }
 0x188   : > { %v3149_v55 = vadd.f32 %v1957_v54, %v766_v36  ;;  %v3071_v56 = vpop.f32.mrb[2].mxu0 }
 0x189   : > { %v2045_v57 = vadd.f32 %v3148_v53, %v3673_v52  ;;  %v3150_v58 = vadd.f32 %v3071_v56, %v2963_v37  ;;  %v1960_v59 = vpop.f32.mrb[3].mxu0 }
 0x18a   : > { %v2043_v60 = vadd.f32 %v3149_v55, %v3673_v52  ;;  %v3151_v61 = vadd.f32 %v1960_v59, %v769_v38  ;;  %v3379_v59 = vld [vmem:[%s3752_s5 + $0x28] sm:$0xff]  }
 0x18b   : > { %v2046_v62 = vadd.f32 %v3150_v58, %v3673_v52  ;;  %v2061_v0 = vmax.f32 %v2045_v57, 0.0 }
 0x18c   : > { %v2044_v63 = vadd.f32 %v3151_v61, %v3673_v52  ;;  %v2059_v2 = vmax.f32 %v2043_v60, 0.0 }
 0x18d   : > { %v2062_v1 = vmax.f32 %v2046_v62, 0.0 }
 0x18e   : > { %v2060_v3 = vmax.f32 %v2044_v63, 0.0  ;;  %v3074_v4 = vpop.f32.mrb[4].mxu0 }
 0x18f   : > { %v2076_v5 = vpack.c.bf16 %v2062_v1, %v2061_v0  ;;  %v3152_v6 = vadd.f32 %v3074_v4, %v2966_v39  ;;  %v1973_v7 = vpop.f32.mrb[5].mxu0 }
 0x190   : > { %v3153_v8 = vadd.f32 %v1973_v7, %v782_v40  ;;  %v3075_v9 = vpop.f32.mrb[6].mxu0  ;;  %v2075_v10 = vpack.c.bf16 %v2060_v3, %v2059_v2  ;;  %v2788_v3 = vld [vmem:[%s3751_s4] ss:$0 sm:$0xff] }
 0x191   : > { %v2049_v11 = vadd.f32 %v3152_v6, %v3673_v52  ;;  %v3154_v12 = vadd.f32 %v3075_v9, %v2967_v41  ;;  %v1976_v13 = vpop.f32.mrb[7].mxu0  ;;  %v3378_v41 = vld [vmem:[%s3752_s5 + $0x20] sm:$0xff]  }
 0x192   : > { %v2047_v15 = vadd.f32 %v3153_v8, %v3673_v52  ;;  %v3155_v16 = vadd.f32 %v1976_v13, %v785_v42  ;;  %3100 = vmatprep.mubr.bf16.mxu1 %v2075_v10 }
 0x193   : > { %v2050_v17 = vadd.f32 %v3154_v12, %v3673_v52  ;;  %3101 = vmatmul.mubr.bf16.vlgmr.msra.gmra.mrb[16].mxu1 %v2076_v5  ;;  %v2065_v19 = vmax.f32 %v2049_v11, 0.0 }
 0x194   : > { %v2048_v18 = vadd.f32 %v3155_v16, %v3673_v52  ;;  %3117 = vmatpush3.bf16.msra.mxu1 %v3374_v34  ;;  %v2063_v22 = vmax.f32 %v2047_v15, 0.0  ;;  %v3377_v34 = vld [vmem:[%s3752_s5 + $0x18] sm:$0xff]  }
 0x195   : > { %v2066_v20 = vmax.f32 %v2050_v17, 0.0  ;;  %3118 = vmatprep.subr.bf16.mxu1 %v3375_v14 }
 0x196   : > { %v2064_v23 = vmax.f32 %v2048_v18, 0.0  ;;  %v3078_v24 = vpop.f32.mrb[8].mxu0 }
 0x197   : > { %v3156_v25 = vadd.f32 %v3078_v24, %v2970_v43  ;;  %v1989_v26 = vpop.f32.mrb[9].mxu0  ;;  %v2078_v27 = vpack.c.bf16 %v2066_v20, %v2065_v19 }
 0x198   : > { %v3157_v28 = vadd.f32 %v1989_v26, %v798_v44  ;;  %v3079_v29 = vpop.f32.mrb[10].mxu0  ;;  %v2077_v30 = vpack.c.bf16 %v2064_v23, %v2063_v22  ;;  %3119 = vmatpush3.bf16.msra.mxu1 %v3375_v14 }
 0x199   : > { %v2053_v31 = vadd.f32 %v3156_v25, %v3673_v52  ;;  %v3158_v32 = vadd.f32 %v3079_v29, %v2971_v45  ;;  %v1992_v33 = vpop.f32.mrb[11].mxu0  ;;  %3120 = vmatprep.subr.bf16.mxu1 %v3376_v21 }
 0x19a   : > { %v2051_v35 = vadd.f32 %v3157_v28, %v3673_v52  ;;  %v3159_v36 = vadd.f32 %v1992_v33, %v801_v46  ;;  %3104 = vmatprep.mubr.bf16.mxu1 %v2077_v30 }
 0x19b   : > { %v2054_v37 = vadd.f32 %v3158_v32, %v3673_v52  ;;  %3105 = vmatmul.mubr.bf16.gmra.mrb[20].mxu1 %v2078_v27  ;;  %v2069_v39 = vmax.f32 %v2053_v31, 0.0 }
 0x19c   : > { %v2052_v38 = vadd.f32 %v3159_v36, %v3673_v52  ;;  %3121 = vmatpush3.bf16.msra.mxu1 %v3376_v21  ;;  %v2067_v42 = vmax.f32 %v2051_v35, 0.0 }
 0x19d   : > { %v2070_v40 = vmax.f32 %v2054_v37, 0.0  ;;  %3122 = vmatprep.subr.bf16.mxu1 %v3377_v34 }
 0x19e   : > { %v2068_v43 = vmax.f32 %v2052_v38, 0.0  ;;  %v3082_v44 = vpop.f32.mrb[12].mxu0 }
 0x19f   : > { %v3160_v45 = vadd.f32 %v3082_v44, %v3662_v47  ;;  %v2005_v46 = vpop.f32.mrb[13].mxu0  ;;  %v2080_v51 = vpack.c.bf16 %v2070_v40, %v2069_v39 }
 0x1a0   : > { %v3161_v53 = vadd.f32 %v2005_v46, %v3664_v48  ;;  %v3083_v54 = vpop.f32.mrb[14].mxu0  ;;  %v2079_v55 = vpack.c.bf16 %v2068_v43, %v2067_v42  ;;  %3123 = vmatpush3.bf16.msra.mxu1 %v3377_v34 }
 0x1a1   : > { %v2057_v56 = vadd.f32 %v3160_v45, %v3673_v52  ;;  %v3162_v57 = vadd.f32 %v3083_v54, %v3666_v49  ;;  %v2008_v58 = vpop.f32.mrb[15].mxu0  ;;  %3124 = vmatprep.subr.bf16.mxu1 %v3378_v41 }
 0x1a2   : > { %v2055_v60 = vadd.f32 %v3161_v53, %v3673_v52  ;;  %v3163_v47 = vadd.f32 %v2008_v58, %v3668_v50  ;;  %3108 = vmatprep.mubr.bf16.mxu1 %v2079_v55  ;;  %v3380_v50 = vld [vmem:[%s3752_s5 + $0x30] sm:$0xff]  }
 0x1a3   : > { %v2058_v48 = vadd.f32 %v3162_v57, %v3673_v52  ;;  %3109 = vmatmul.mubr.bf16.gmra.mrb[24].mxu1 %v2080_v51  ;;  %v2073_v62 = vmax.f32 %v2057_v56, 0.0 }
 0x1a4   : > { %v2056_v61 = vadd.f32 %v3163_v47, %v3673_v52  ;;  %3125 = vmatpush3.bf16.msra.mxu1 %v3378_v41  ;;  %v2071_v49 = vmax.f32 %v2055_v60, 0.0  ;;  %v3381_v52 = vld [vmem:[%s3752_s5 + $0x38] sm:$0xff]  }
 0x1a5   : > { %v2074_v63 = vmax.f32 %v2058_v48, 0.0  ;;  %3126 = vmatprep.subr.bf16.mxu1 %v3379_v59 }
 0x1a6   : > { %v2072_v0 = vmax.f32 %v2056_v61, 0.0 }
 0x1a7   : > { %v2082_v1 = vpack.c.bf16 %v2074_v63, %v2073_v62  ;;  %v2797_v63 = vld [vmem:[%s3753_s6] ss:$0 sm:$0xff] }
 0x1a8   : > { %v2081_v2 = vpack.c.bf16 %v2072_v0, %v2071_v49  ;;  %3127 = vmatpush3.bf16.msra.mxu1 %v3379_v59 }
 0x1a9   : > { %3128 = vmatprep.subr.bf16.mxu1 %v3380_v50 }
 0x1aa   : > { %3112 = vmatprep.mubr.bf16.mxu1 %v2081_v2 }
 0x1ab   : > { %3113 = vmatmul.mubr.bf16.gmra.mrb[28].mxu1 %v2082_v1 }
 0x1ac   : > { %3129 = vmatpush3.bf16.msra.mxu1 %v3380_v50 }
 0x1ad   : > { %3130 = vmatprep.subr.bf16.mxu1 %v3381_v52 }
 0x1b0   : > { %3131 = vmatpush3.bf16.msra.mxu1 %v3381_v52 }
 0x266   : > { %v3102_v4 = vpop.f32.mrb[16].mxu1 }
 0x267   : > { %v2197_v5 = vadd.f32 %v3102_v4, %v2788_v3  ;;  %v2188_v6 = vpop.f32.mrb[17].mxu1 }
 0x268   : > { %v2189_v7 = vadd.f32 %v2788_v3, %v2188_v6  ;;  %v3103_v8 = vpop.f32.mrb[18].mxu1 }
 0x269   : > { %v2200_v9 = vadd.f32 %v3103_v8, %v2788_v3  ;;  %v2191_v10 = vpop.f32.mrb[19].mxu1  ;;  %v2253_v12 = vmax.f32 %v2197_v5, 0.0 }
 0x26a   : > { %v2192_v11 = vadd.f32 %v2788_v3, %v2191_v10  ;;  %v2251_v14 = vmax.f32 %v2189_v7, 0.0 }
 0x26b   : > { %v2254_v13 = vmax.f32 %v2200_v9, 0.0 }
 0x26c   : > { %v2252_v15 = vmax.f32 %v2192_v11, 0.0 }
 0x26d   : > { %v2268_v16 = vpack.c.bf16 %v2254_v13, %v2253_v12 }
 0x26e   : > { %v2267_v17 = vpack.c.bf16 %v2252_v15, %v2251_v14  ;;  %v3106_v18 = vpop.f32.mrb[20].mxu1 }
 0x26f   : > { %v2213_v19 = vadd.f32 %v3106_v18, %v2788_v3  ;;  %v2204_v20 = vpop.f32.mrb[21].mxu1 }
 0x270   : > { %v2205_v21 = vadd.f32 %v2788_v3, %v2204_v20  ;;  %v3107_v22 = vpop.f32.mrb[22].mxu1  ;;  %3132 = vmatprep.mubr.bf16.mxu1 %v2267_v17 }
 0x271   : > { %v2216_v23 = vadd.f32 %v3107_v22, %v2788_v3  ;;  %v2207_v24 = vpop.f32.mrb[23].mxu1  ;;  %3133 = vmatmul.mubr.bf16.vlgmr.msra.gmra.mrb[32].mxu1 %v2268_v16  ;;  %v2257_v26 = vmax.f32 %v2213_v19, 0.0 }
 0x272   : > { %v2208_v25 = vadd.f32 %v2788_v3, %v2207_v24  ;;  %v2255_v28 = vmax.f32 %v2205_v21, 0.0 }
 0x273   : > { %v2258_v27 = vmax.f32 %v2216_v23, 0.0 }
 0x274   : > { %v2256_v29 = vmax.f32 %v2208_v25, 0.0 }
 0x275   : > { %v2270_v30 = vpack.c.bf16 %v2258_v27, %v2257_v26 }
 0x276   : > { %v2269_v31 = vpack.c.bf16 %v2256_v29, %v2255_v28  ;;  %v3110_v32 = vpop.f32.mrb[24].mxu1 }
 0x277   : > { %v2229_v33 = vadd.f32 %v3110_v32, %v2788_v3  ;;  %v2220_v34 = vpop.f32.mrb[25].mxu1 }
 0x278   : > { %v2221_v35 = vadd.f32 %v2788_v3, %v2220_v34  ;;  %v3111_v36 = vpop.f32.mrb[26].mxu1  ;;  %3136 = vmatprep.mubr.bf16.mxu1 %v2269_v31 }
 0x279   : > { %v2232_v37 = vadd.f32 %v3111_v36, %v2788_v3  ;;  %v2223_v38 = vpop.f32.mrb[27].mxu1  ;;  %3137 = vmatmul.mubr.bf16.gmra.mrb[36].mxu1 %v2270_v30  ;;  %v2261_v40 = vmax.f32 %v2229_v33, 0.0 }
 0x27a   : > { %v2224_v39 = vadd.f32 %v2788_v3, %v2223_v38  ;;  %v2259_v42 = vmax.f32 %v2221_v35, 0.0 }
 0x27b   : > { %v2262_v41 = vmax.f32 %v2232_v37, 0.0 }
 0x27c   : > { %v2260_v43 = vmax.f32 %v2224_v39, 0.0 }
 0x27d   : > { %v2272_v44 = vpack.c.bf16 %v2262_v41, %v2261_v40 }
 0x27e   : > { %v2271_v45 = vpack.c.bf16 %v2260_v43, %v2259_v42  ;;  %v3114_v46 = vpop.f32.mrb[28].mxu1 }
 0x27f   : > { %v2245_v51 = vadd.f32 %v3114_v46, %v2788_v3  ;;  %v2236_v53 = vpop.f32.mrb[29].mxu1 }
 0x280   : > { %v2237_v54 = vadd.f32 %v2788_v3, %v2236_v53  ;;  %v3115_v55 = vpop.f32.mrb[30].mxu1  ;;  %3140 = vmatprep.mubr.bf16.mxu1 %v2271_v45 }
 0x281   : > { %v2248_v56 = vadd.f32 %v3115_v55, %v2788_v3  ;;  %v2239_v57 = vpop.f32.mrb[31].mxu1  ;;  %3141 = vmatmul.mubr.bf16.gmra.mrb[40].mxu1 %v2272_v44  ;;  %v2265_v59 = vmax.f32 %v2245_v51, 0.0 }
 0x282   : > { %v2240_v58 = vadd.f32 %v2788_v3, %v2239_v57  ;;  %v2263_v47 = vmax.f32 %v2237_v54, 0.0 }
 0x283   : > { %v2266_v60 = vmax.f32 %v2248_v56, 0.0 }
 0x284   : > { %v2264_v48 = vmax.f32 %v2240_v58, 0.0 }
 0x285   : > { %v2274_v61 = vpack.c.bf16 %v2266_v60, %v2265_v59 }
 0x286   : > { %v2273_v62 = vpack.c.bf16 %v2264_v48, %v2263_v47 }
 0x288   : > { %3144 = vmatprep.mubr.bf16.mxu1 %v2273_v62 }
 0x289   : > { %3145 = vmatmul.mubr.bf16.gmra.mrb[44].mxu1 %v2274_v61 }
 0x344   : > { %v3134_v49 = vpop.f32.mrb[32].mxu1 }
 0x345   : > { %v2388_v0 = vadd.f32 %v3134_v49, %v2797_v63  ;;  %v2380_v1 = vpop.f32.mrb[33].mxu1 }
 0x346   : > { %v2381_v2 = vadd.f32 %v2797_v63, %v2380_v1  ;;  %v3135_v50 = vpop.f32.mrb[34].mxu1 }
 0x347   : > { %v2436_v52 = vmax.f32 %v2388_v0, 0.0  ;;  %v2383_v3 = vpop.f32.mrb[35].mxu1 }
 0x348   : > { %v2435_v4 = vmax.f32 %v2381_v2, 0.0 }
 0x349   : > { %v2444_v5 = vpack.c.bf16 %v2436_v52, %v2436_v52 }
 0x34a   : > { %v2443_v6 = vpack.c.bf16 %v2435_v4, %v2435_v4 }
 0x34b   : > { %2453 = vst.msk [vmem:[%s3726_s26 + $0x4] sm:$0xf] %vm2451_vm2, %v2444_v5 }
 0x34c   : > { %2452 = vst.msk [vmem:[%s3726_s26] sm:$0xf] %vm2451_vm2, %v2443_v6  ;;  %v3138_v7 = vpop.f32.mrb[36].mxu1 }
 0x34d   : > { %v2402_v8 = vadd.f32 %v3138_v7, %v2797_v63  ;;  %v2394_v9 = vpop.f32.mrb[37].mxu1 }
 0x34e   : > { %v2395_v10 = vadd.f32 %v2797_v63, %v2394_v9  ;;  %v3139_v11 = vpop.f32.mrb[38].mxu1 }
 0x34f   : > { %v2438_v12 = vmax.f32 %v2402_v8, 0.0  ;;  %v2397_v13 = vpop.f32.mrb[39].mxu1 }
 0x350   : > { %v2437_v14 = vmax.f32 %v2395_v10, 0.0 }
 0x351   : > { %v2446_v15 = vpack.c.bf16 %v2438_v12, %v2438_v12 }
 0x352   : > { %v2445_v16 = vpack.c.bf16 %v2437_v14, %v2437_v14 }
 0x353   : > { %2455 = vst.msk [vmem:[%s3726_s26 + $0xc] sm:$0xf] %vm2451_vm2, %v2446_v15 }
 0x354   : > { %2454 = vst.msk [vmem:[%s3726_s26 + $0x8] sm:$0xf] %vm2451_vm2, %v2445_v16  ;;  %v3142_v17 = vpop.f32.mrb[40].mxu1 }
 0x355   : > { %v2416_v18 = vadd.f32 %v3142_v17, %v2797_v63  ;;  %v2408_v19 = vpop.f32.mrb[41].mxu1 }
 0x356   : > { %v2409_v20 = vadd.f32 %v2797_v63, %v2408_v19  ;;  %v3143_v21 = vpop.f32.mrb[42].mxu1 }
 0x357   : > { %v2440_v22 = vmax.f32 %v2416_v18, 0.0  ;;  %v2411_v23 = vpop.f32.mrb[43].mxu1 }
 0x358   : > { %v2439_v24 = vmax.f32 %v2409_v20, 0.0 }
 0x359   : > { %v2448_v25 = vpack.c.bf16 %v2440_v22, %v2440_v22 }
 0x35a   : > { %v2447_v26 = vpack.c.bf16 %v2439_v24, %v2439_v24 }
 0x35b   : > { %2457 = vst.msk [vmem:[%s3726_s26 + $0x14] sm:$0xf] %vm2451_vm2, %v2448_v25 }
 0x35c   : > { %2456 = vst.msk [vmem:[%s3726_s26 + $0x10] sm:$0xf] %vm2451_vm2, %v2447_v26  ;;  %v3146_v27 = vpop.f32.mrb[44].mxu1 }
 0x35d   : > { %v2430_v28 = vadd.f32 %v3146_v27, %v2797_v63  ;;  %v2422_v29 = vpop.f32.mrb[45].mxu1 }
 0x35e   : > { %v2423_v30 = vadd.f32 %v2797_v63, %v2422_v29  ;;  %v3147_v31 = vpop.f32.mrb[46].mxu1 }
 0x35f   : > { %v2442_v32 = vmax.f32 %v2430_v28, 0.0  ;;  %v2425_v33 = vpop.f32.mrb[47].mxu1 }
 0x360   : > { %v2441_v34 = vmax.f32 %v2423_v30, 0.0 }
 0x361   : > { %v2450_v35 = vpack.c.bf16 %v2442_v32, %v2442_v32 }
 0x362   : > { %v2449_v36 = vpack.c.bf16 %v2441_v34, %v2441_v34 }
 0x363   : > { %2459 = vst.msk [vmem:[%s3726_s26 + $0x1c] sm:$0xf] %vm2451_vm2, %v2450_v35 }
 0x364   : > { %2458 = vst.msk [vmem:[%s3726_s26 + $0x18] sm:$0xf] %vm2451_vm2, %v2449_v36 }
 0x365 PF: > { %s17_s24 = sadd.s32 1, %s3388_s24  }
 0x366   : > { %p14_p4 = scmp.ge.s32.totalorder %s17_s24, 4  }
 0x368   :  { %16 = sbr.rel (!%p14_p4) target bundleno = 1 (0x1), region = 91 }

// kernel: nin_forward.3
= control target key start
LH: loop header
LB: loop body
LE: loop exit
PB: predicated region body
PF: predicated region fallthrough
CT: control target
= control target key end

     0   :  { %14 = vsyncpa [#allocation3], 0  ;;  %s2948_s0 = inlined_call_operand.vmem [shape: bf16[2,6,80,8], index: 0, kind: input, shape index: {}]   ;;  %s2949_s1 = inlined_call_operand.vmem [shape: bf16[9,8,128], index: 1, kind: input, shape index: {}]   ;;  %s2950_s2 = inlined_call_operand.vmem [shape: f32[1,128], index: 2, kind: input, shape index: {}]   ;;  %s2951_s3 = inlined_call_operand.vmem [shape: bf16[128,128], index: 3, kind: input, shape index: {}]   ;;  %s2952_s4 = inlined_call_operand.vmem [shape: f32[1,128], index: 4, kind: input, shape index: {}]   ;;  %s2953_s5 = inlined_call_operand.vmem [shape: bf16[128,128], index: 5, kind: input, shape index: {}]   ;;  %s2954_s6 = inlined_call_operand.vmem [shape: f32[1,128], index: 6, kind: input, shape index: {}]   ;;  %s2955_s7 = inlined_call_operand.vmem [shape: f32[128,128], index: 7, kind: input, shape index: {}]   ;;  %s2956_s8 = inlined_call_operand.vmem [shape: f32[1,128], index: 8, kind: input, shape index: {}]   ;;  %s2957_s9 = inlined_call_operand.hbm [shape: f32[2,1,128], index: 9, kind: output, shape index: {}]  }
   0x1   :  { %16 = vsyncpa [#allocation3 + $0x1], 0  ;;  %s2617_s30 = smov 0   ;;  %s2619_s10 = smov 0  }
   0x2   :  { %s2621_s11 = smov 0   ;;  %s2623_s12 = smov 0  }
   0x3 LB: > { %s2638_s13 = sadd.s32 4294967295, %s2561_s12   ;;  %s1885_s14 = sadd.s32 4294967294, %s2561_s12   ;;  %s2561_s12 = sphi %s2623_s12, %s2963_s12   ;;  %s2557_s11 = sphi %s2621_s11, %s2962_s11   ;;  %s2553_s10 = sphi %s2619_s10, %s2961_s10   ;;  %s2549_s30 = sphi %s2617_s30, %s2960_s30  }
   0x4   : > { %s2642_s15 = sadd.s32 1, %s2561_s12   ;;  %s223_s16 = sadd.s32 1, %s2557_s11 }
   0x5   : > { %s220_s17 = ssub.s32 %s2561_s12, %s2642_s15  ;;  %p233_p0 = scmp.ne.s32.totalorder %s2557_s11, %s2553_s10 }
   0x6   : > { %p221_p1 = scmp.eq.s32.totalorder %s220_s17, 0  ;;  %p234_p2 = scmp.eq.s32.totalorder %s2638_s13, 1 }
   0x7   : > { %p239_p3 = scmp.ne.s32.totalorder %s2553_s10, %s2549_s30  ;;  %p240_p4 = scmp.eq.s32.totalorder %s1885_s14, 1 }
   0x8   : > { %s2653_s18 = scalar_select %p221_p1, %s2557_s11, %s223_s16  }
   0x9   : > { %p2655_p5 = por %p234_p2, %p233_p0  ;;  %p2659_p6 = por %p240_p4, %p239_p3 }
   0xa   : > { %p1888_p7 = scmp.ge.s32.totalorder %s2561_s12, 1  ;;  %p290_p8 = scmp.lt.s32.totalorder %s2561_s12, 3 }
   0xc   : > { %p291_p9 = pnand %p1888_p7, %p290_p8 }
   0xd   : > { %vm384_vm0 = vcmask (!%p291_p9), 1043456   ;;  %v1923_v0 = vld [vmem:[%s2949_s1 + $0x8] sm:$0xf] (!%p291_p9)  ;;  %p325_p10 = scmp.lt.s32.totalorder (!%p291_p9), %s2638_s13, 1  ;;  %v1940_v2 = vld [vmem:[%s2949_s1 + $0xc] sm:$0xf] (!%p291_p9) }
   0xe   : > { %294 = sbr.rel (%p291_p9) target bundleno = 1042 (0x412), region = 56  ;;  %2397 = vmatprep.subr.msk.bf16.mxu0 (!%p291_p9), %vm384_vm0, %v1923_v0  ;;  %v597_v1 = vsel (!%p291_p9), %vm384_vm0, %v1923_v0, 0  ;;  %v1898_v3 = vld [vmem:[%s2949_s1 + $0x4] sm:$0xf] (!%p291_p9)  ;;  %v339_v5 = vld [vmem:[%s2949_s1] sm:$0xf] (!%p291_p9) }
   0xf   : > { %2155 = vmatpush3.bf16.msra.mxu0 (!%p291_p9), %v597_v1  ;;  %2395 = vmatprep.subr.msk.bf16.mxu1 (!%p291_p9), %vm384_vm0, %v1898_v3  ;;  %v386_v4 = vsel (!%p291_p9), %vm384_vm0, %v1898_v3, 0  ;;  %vm371_vm1 = vcmask (!%p291_p9), 64512   ;;  %v1957_v7 = vld [vmem:[%s2949_s1 + $0x10] sm:$0xf] (!%p291_p9)  ;;  %v716_v9 = vsel (!%p291_p9), %vm384_vm0, %v1940_v2, 0  ;;  %v486_v19 = vsel (!%p291_p9), %vm384_vm0, %v339_v5, 0 }
  0x10   : > { %2398 = vmatprep.subr.msk.bf16.mxu0 (!%p291_p9), %vm384_vm0, %v1940_v2  ;;  %2135 = vmatpush3.bf16.msra.mxu1 (!%p291_p9), %v386_v4  ;;  %v1974_v15 = vld [vmem:[%s2949_s1 + $0x14] sm:$0xf] (!%p291_p9)  ;;  %v835_v17 = vsel (!%p291_p9), %vm384_vm0, %v1957_v7, 0  ;;  %v1983_v30 = vld [vmem:[%s2949_s1 + $0x18] sm:$0xf] (!%p291_p9)  ;;  %v2483_v54 = vld [vmem:[%s2951_s3] sm:$0xff] (!%p291_p9)  }
  0x11   : > { %2396 = vmatprep.subr.msk.bf16.mxu1 (!%p291_p9), %vm384_vm0, %v339_v5  ;;  %v954_v28 = vsel (!%p291_p9), %vm384_vm0, %v1974_v15, 0  ;;  %v1072_v36 = vsel (!%p291_p9), %vm384_vm0, %v1983_v30, 0  ;;  %v2000_v37 = vld [vmem:[%s2949_s1 + $0x1c] sm:$0xf] (!%p291_p9)  ;;  %v2017_v43 = vld [vmem:[%s2949_s1 + $0x20] sm:$0xf] (!%p291_p9) }
  0x12   : > { %v1190_v42 = vsel (!%p291_p9), %vm384_vm0, %v2000_v37, 0  ;;  %v1308_v48 = vsel (!%p291_p9), %vm384_vm0, %v2017_v43, 0  ;;  %v2484_v55 = vld [vmem:[%s2951_s3 + $0x8] sm:$0xff] (!%p291_p9)   ;;  %v2485_v56 = vld [vmem:[%s2951_s3 + $0x10] sm:$0xff] (!%p291_p9)   ;;  %v2486_v57 = vld [vmem:[%s2951_s3 + $0x18] sm:$0xff] (!%p291_p9)   ;;  %vm2564_vm2 = vmmov (!%p291_p9), 0  }
  0x13   : > { %v2487_v58 = vld [vmem:[%s2951_s3 + $0x20] sm:$0xff] (!%p291_p9)   ;;  %v2488_v59 = vld [vmem:[%s2951_s3 + $0x28] sm:$0xff] (!%p291_p9)   ;;  %v2489_v60 = vld [vmem:[%s2951_s3 + $0x30] sm:$0xff] (!%p291_p9)   ;;  %s323_s14 = sand.u32 (!%p291_p9), 1, %s2553_s10   ;;  %s2045_s22 = sshll.u32 (!%p291_p9), %s2638_s13, 4 }
  0x14   : > { %v2490_v61 = vld [vmem:[%s2951_s3 + $0x38] sm:$0xff] (!%p291_p9)   ;;  %v2491_v62 = vld [vmem:[%s2953_s5] sm:$0xff] (!%p291_p9)   ;;  %s324_s23 = scalar_lea.vmem (!%p291_p9), [#allocation2], %s323_s14  ;;  %s1818_s27 = scalar_lea.sflag (!%p291_p9), [#allocation3], %s323_s14 }
  0x15   : > { %s326_s25 = scalar_select %p325_p10, %s2638_s13, 1 }
  0x16   : > { %s1830_s24 = sshll.u32 %s324_s23, 4  ;;  %s2566_s13 = smov [#allocation2]   ;;  %s2908_s24 = int_to_ptr.vmem [resolvable:$true] %s1830_s24 }
  0x17   : > { %s2404_s28 = smul.u32 240, %s326_s25  ;;  %s2503_s29 = sshll.u32 %s2566_s13, 4  ;;  %s2504_s29 = int_to_ptr.vmem [resolvable:$false] %s2503_s29 }
  0x18   : > { %s2505_s16 = scalar_lea.vmem %s2504_s29, 32  ;;  %p2506_p0 = scmp.lt.s32.totalorder %s2908_s24, %s2504_s29 }
  0x19   : > { %s2687_s21 = scalar_lea.vmem %s2948_s0, %s2404_s28  ;;  %s2499_s28 = scalar_lea.vmem %s2908_s24, 16 }
  0x1a   : > { %v2447_v6 = vld [vmem:[%s2687_s21 + $0x50] sm:$0xff]   ;;  %v2448_v8 = vld [vmem:[%s2687_s21 + $0x58] sm:$0xff]   ;;  %v2449_v10 = vld [vmem:[%s2687_s21 + $0x60] sm:$0xff]   ;;  %p2500_p11 = scmp.ne.s32.totalorder %s2908_s24, %s2499_s28  ;;  %p2507_p1 = scmp.lt.s32.totalorder %s2505_s16, %s2499_s28 }
  0x1b   : > { %2156 = vmatprep.mubr.msk.bf16.mxu0 %vm371_vm1, %v2447_v6  ;;  %v2450_v11 = vld [vmem:[%s2687_s21 + $0x68] sm:$0xff]   ;;  %v2451_v12 = vld [vmem:[%s2687_s21 + $0x78] sm:$0xff]   ;;  %v2452_v13 = vld [vmem:[%s2687_s21 + $0x80] sm:$0xff]  }
  0x1c   : > { %2157 = vmatmul.mubr.msk.bf16.vlgmr.msra.gmra.mrb[0].mxu0 %vm371_vm1, %v2448_v8  ;;  %v2453_v14 = vld [vmem:[%s2687_s21 + $0x88] sm:$0xff]   ;;  %v2464_v18 = vld [vmem:[%s2687_s21 + $0x30] sm:$0xff]   ;;  %v2467_v20 = vld [vmem:[%s2687_s21 + $0x38] sm:$0xff]   ;;  %p2501_p12 = pnand %p2500_p11, %p2655_p5  ;;  %p2508_p2 = por %p2507_p1, %p2506_p0 }
  0x1d   : > { %2165 = vmatpush3.bf16.msra.mxu0 %v716_v9  ;;  %2160 = vmatprep.mubr.msk.bf16.mxu0 %vm371_vm1, %v2449_v10  ;;  %v2463_v16 = vld [vmem:[%s2687_s21 + $0x28] sm:$0xff]   ;;  %v2454_v21 = vld [vmem:[%s2687_s21 + $0x90] sm:$0xff]   ;;  %v2455_v22 = vld [vmem:[%s2687_s21 + $0xa0] sm:$0xff]  }
  0x1e   : > { %2399 = vmatprep.subr.msk.bf16.mxu0 %vm384_vm0, %v1957_v7  ;;  %2136 = vmatprep.mubr.msk.bf16.mxu1 %vm371_vm1, %v2463_v16  ;;  %v2468_v23 = vld [vmem:[%s2687_s21 + $0x40] sm:$0xff]   ;;  %v2456_v25 = vld [vmem:[%s2687_s21 + $0xa8] sm:$0xff]   ;;  %v2457_v27 = vld [vmem:[%s2687_s21 + $0xb0] sm:$0xff]   ;;  %p2502_p13 = pneg %p2501_p12 }
  0x1f   : > { %2137 = vmatmul.mubr.msk.bf16.vlgmr.msra.gmra.mrb[0].mxu1 %vm371_vm1, %v2464_v18  ;;  %v2471_v24 = vld [vmem:[%s2687_s21] sm:$0xff]   ;;  %v2472_v26 = vld [vmem:[%s2687_s21 + $0x8] sm:$0xff]   ;;  %v2475_v29 = vld [vmem:[%s2687_s21 + $0x10] sm:$0xff]  }
  0x20   : > { %2145 = vmatpush3.bf16.msra.mxu1 %v486_v19  ;;  %2140 = vmatprep.mubr.msk.bf16.mxu1 %vm371_vm1, %v2467_v20  ;;  %v2458_v31 = vld [vmem:[%s2687_s21 + $0xb8] sm:$0xff]   ;;  %v2459_v33 = vld [vmem:[%s2687_s21 + $0xc8] sm:$0xff]   ;;  %v2460_v34 = vld [vmem:[%s2687_s21 + $0xd0] sm:$0xff]   ;;  %p2509_p3 = pnand %p2508_p2, %p2502_p13 }
  0x21   : > { %v2476_v32 = vld [vmem:[%s2687_s21 + $0x18] sm:$0xff]   ;;  %v2462_v38 = vld [vmem:[%s2687_s21 + $0xe0] sm:$0xff]   ;;  %v2465_v39 = vld [vmem:[%s2687_s21 + $0x8] sm:$0xff]   ;;  %2224 = vmatprep.subr.bf16.mxu1 %v2483_v54 }
  0x22   : > { %v2461_v35 = vld [vmem:[%s2687_s21 + $0xd8] sm:$0xff]   ;;  %v2466_v40 = vld [vmem:[%s2687_s21 + $0x10] sm:$0xff]   ;;  %v2470_v44 = vld [vmem:[%s2687_s21 + $0x20] sm:$0xff]  }
  0x23   : > { %v2469_v41 = vld [vmem:[%s2687_s21 + $0x18] sm:$0xff]   ;;  %v2473_v45 = vld [vmem:[%s2687_s21 + $0x30] sm:$0xff]   ;;  %v2477_v47 = vld [vmem:[%s2687_s21 + $0x40] sm:$0xff]  }
  0x24   : > { %2161 = vmatmul.mubr.msk.bf16.gmra.mrb[4].mxu0 %vm371_vm1, %v2450_v11  ;;  %v2474_v46 = vld [vmem:[%s2687_s21 + $0x38] sm:$0xff]   ;;  %v2478_v49 = vld [vmem:[%s2687_s21 + $0x48] sm:$0xff]   ;;  %v2480_v51 = vld [vmem:[%s2687_s21 + $0x60] sm:$0xff]  }
  0x25   : > { %2166 = vmatprep.mubr.msk.bf16.mxu0 %vm371_vm1, %v2451_v12  ;;  %v2479_v50 = vld [vmem:[%s2687_s21 + $0x58] sm:$0xff]   ;;  %v2481_v52 = vld [vmem:[%s2687_s21 + $0x68] sm:$0xff]   ;;  %v2482_v53 = vld [vmem:[%s2687_s21 + $0x70] sm:$0xff]   ;;  %s2906_s21 = scalar_lea.hbm %s2957_s9, %s2045_s22 }
  0x26   : > { %v2026_v8 = vld [vmem:[%s2950_s2] ss:$0 sm:$0xff] }
  0x27   : > { %2141 = vmatmul.mubr.msk.bf16.gmra.mrb[4].mxu1 %vm371_vm1, %v2468_v23 }
  0x28   : > { %2146 = vmatprep.mubr.msk.bf16.mxu1 %vm371_vm1, %v2471_v24 }
  0x2c   : > { %2167 = vmatmul.mubr.msk.bf16.vlgmr.msra.gmra.mrb[0].mxu0 %vm371_vm1, %v2452_v13 }
  0x2d   : > { %2175 = vmatpush3.bf16.msra.mxu0 %v835_v17  ;;  %2170 = vmatprep.mubr.msk.bf16.mxu0 %vm371_vm1, %v2453_v14 }
  0x2e   : > { %2400 = vmatprep.subr.msk.bf16.mxu0 %vm384_vm0, %v1974_v15 }
  0x2f   : > { %2147 = vmatmul.mubr.msk.bf16.vlgmr.msra.gmra.mrb[0].mxu1 %vm371_vm1, %v2472_v26 }
  0x30   : > { %2150 = vmatprep.mubr.msk.bf16.mxu1 %vm371_vm1, %v2475_v29  ;;  %2225 = vmatpush3.bf16.msra.mxu1 %v2483_v54 }
  0x31   : > { %2226 = vmatprep.subr.bf16.mxu1 %v2484_v55 }
  0x34   : > { %2171 = vmatmul.mubr.msk.bf16.gmra.mrb[4].mxu0 %vm371_vm1, %v2454_v21  ;;  %2227 = vmatpush3.bf16.msra.mxu1 %v2484_v55 }
  0x35   : > { %2176 = vmatprep.mubr.msk.bf16.mxu0 %vm371_vm1, %v2455_v22  ;;  %2228 = vmatprep.subr.bf16.mxu1 %v2485_v56 }
  0x37   : > { %2151 = vmatmul.mubr.msk.bf16.gmra.mrb[4].mxu1 %vm371_vm1, %v2476_v32 }
  0x38   : > { %2229 = vmatpush3.bf16.msra.mxu1 %v2485_v56 }
  0x39   : > { %2230 = vmatprep.subr.bf16.mxu1 %v2486_v57 }
  0x3c   : > { %2177 = vmatmul.mubr.msk.bf16.vlgmr.msra.gmra.mrb[0].mxu0 %vm371_vm1, %v2456_v25  ;;  %2231 = vmatpush3.bf16.msra.mxu1 %v2486_v57 }
  0x3d   : > { %2185 = vmatpush3.bf16.msra.mxu0 %v954_v28  ;;  %2180 = vmatprep.mubr.msk.bf16.mxu0 %vm371_vm1, %v2457_v27 }
  0x3e   : > { %2401 = vmatprep.subr.msk.bf16.mxu0 %vm384_vm0, %v1983_v30  ;;  %2232 = vmatprep.subr.bf16.mxu1 %v2487_v58 }
  0x40   : > { %2233 = vmatpush3.bf16.msra.mxu1 %v2487_v58 }
  0x41   : > { %2234 = vmatprep.subr.bf16.mxu1 %v2488_v59 }
  0x44   : > { %2181 = vmatmul.mubr.msk.bf16.gmra.mrb[4].mxu0 %vm371_vm1, %v2458_v31  ;;  %2235 = vmatpush3.bf16.msra.mxu1 %v2488_v59 }
  0x45   : > { %2186 = vmatprep.mubr.msk.bf16.mxu0 %vm371_vm1, %v2459_v33  ;;  %2236 = vmatprep.subr.bf16.mxu1 %v2489_v60 }
  0x48   : > { %2237 = vmatpush3.bf16.msra.mxu1 %v2489_v60 }
  0x49   : > { %2238 = vmatprep.subr.bf16.mxu1 %v2490_v61 }
  0x4c   : > { %2187 = vmatmul.mubr.msk.bf16.vlgmr.msra.gmra.mrb[0].mxu0 %vm371_vm1, %v2460_v34  ;;  %2239 = vmatpush3.bf16.msra.mxu1 %v2490_v61  ;;  %v2492_v34 = vld [vmem:[%s2953_s5 + $0x8] sm:$0xff]  }
  0x4d   : > { %2195 = vmatpush3.bf16.msra.mxu0 %v1072_v36  ;;  %2190 = vmatprep.mubr.msk.bf16.mxu0 %vm371_vm1, %v2461_v35 }
  0x4e   : > { %2402 = vmatprep.subr.msk.bf16.mxu0 %vm384_vm0, %v2000_v37  ;;  %2248 = vmatprep.subr.bf16.mxu1 %v2491_v62 }
  0x54   : > { %2191 = vmatmul.mubr.msk.bf16.gmra.mrb[4].mxu0 %vm371_vm1, %v2462_v38 }
  0x55   : > { %2196 = vmatprep.mubr.msk.bf16.mxu0 %vm371_vm1, %v2465_v39 }
  0x5c   : > { %2197 = vmatmul.mubr.msk.bf16.vlgmr.msra.gmra.mrb[0].mxu0 %vm371_vm1, %v2466_v40 }
  0x5d   : > { %2205 = vmatpush3.bf16.msra.mxu0 %v1190_v42  ;;  %2200 = vmatprep.mubr.msk.bf16.mxu0 %vm371_vm1, %v2469_v41  ;;  %v2493_v41 = vld [vmem:[%s2953_s5 + $0x10] sm:$0xff]  }
  0x5e   : > { %2403 = vmatprep.subr.msk.bf16.mxu0 %vm384_vm0, %v2017_v43 }
  0x64   : > { %2201 = vmatmul.mubr.msk.bf16.gmra.mrb[4].mxu0 %vm371_vm1, %v2470_v44 }
  0x65   : > { %2206 = vmatprep.mubr.msk.bf16.mxu0 %vm371_vm1, %v2473_v45 }
  0x6c   : > { %2207 = vmatmul.mubr.msk.bf16.vlgmr.msra.gmra.mrb[0].mxu0 %vm371_vm1, %v2474_v46  ;;  %v2494_v46 = vld [vmem:[%s2953_s5 + $0x18] sm:$0xff]  }
  0x6d   : > { %2215 = vmatpush3.bf16.msra.mxu0 %v1308_v48  ;;  %2210 = vmatprep.mubr.msk.bf16.mxu0 %vm371_vm1, %v2477_v47  ;;  %v2495_v47 = vld [vmem:[%s2953_s5 + $0x20] sm:$0xff]   ;;  %v2496_v48 = vld [vmem:[%s2953_s5 + $0x28] sm:$0xff]  }
  0x74   : > { %2211 = vmatmul.mubr.msk.bf16.gmra.mrb[4].mxu0 %vm371_vm1, %v2478_v49  ;;  %v2497_v49 = vld [vmem:[%s2953_s5 + $0x30] sm:$0xff]  }
  0x75   : > { %2216 = vmatprep.mubr.msk.bf16.mxu0 %vm371_vm1, %v2479_v50  ;;  %v2498_v50 = vld [vmem:[%s2953_s5 + $0x38] sm:$0xff]  }
  0x7c   : > { %2217 = vmatmul.mubr.msk.bf16.vlgmr.msra.gmra.mrb[0].mxu0 %vm371_vm1, %v2480_v51  ;;  %v2027_v51 = vld [vmem:[%s2952_s4] ss:$0 sm:$0xff] }
  0x7d   : > { %2220 = vmatprep.mubr.msk.bf16.mxu0 %vm371_vm1, %v2481_v52 }
  0x84   : > { %2221 = vmatmul.mubr.msk.bf16.gmra.mrb[4].mxu0 %vm371_vm1, %v2482_v53 }
 0x102   : > { %v2148_v63 = vpop.f32.mrb[0].mxu1 }
 0x103   : > { %v522_v0 = vpop.f32.mrb[1].mxu1 }
 0x104   : > { %v2149_v1 = vpop.f32.mrb[2].mxu1 }
 0x105   : > { %v525_v2 = vpop.f32.mrb[3].mxu1 }
 0x10a   : > { %v2152_v3 = vpop.f32.mrb[4].mxu1 }
 0x10b   : > { %v538_v4 = vpop.f32.mrb[5].mxu1 }
 0x10c   : > { %v2153_v5 = vpop.f32.mrb[6].mxu1 }
 0x10d   : > { %v541_v6 = vpop.f32.mrb[7].mxu1 }
 0x14f   : > { %v2218_v7 = vpop.f32.mrb[0].mxu0 }
 0x150   : > { %v2331_v9 = vadd.f32 %v2218_v7, %v2148_v63  ;;  %v1344_v10 = vpop.f32.mrb[1].mxu0 }
 0x151   : > { %v2332_v11 = vadd.f32 %v1344_v10, %v522_v0  ;;  %v2219_v12 = vpop.f32.mrb[2].mxu0 }
 0x152   : > { %v1392_v13 = vadd.f32 %v2331_v9, %v2026_v8  ;;  %v2333_v14 = vadd.f32 %v2219_v12, %v2149_v1  ;;  %v1347_v15 = vpop.f32.mrb[3].mxu0 }
 0x153   : > { %v1390_v16 = vadd.f32 %v2332_v11, %v2026_v8  ;;  %v2334_v17 = vadd.f32 %v1347_v15, %v525_v2 }
 0x154   : > { %v1393_v18 = vadd.f32 %v2333_v14, %v2026_v8  ;;  %v1400_v20 = vmax.f32 %v1392_v13, 0.0 }
 0x155   : > { %v1391_v19 = vadd.f32 %v2334_v17, %v2026_v8  ;;  %v1398_v22 = vmax.f32 %v1390_v16, 0.0  ;;  %v1729_v16 = vld [vmem:[%s2955_s7] sm:$0xff]  ;;  %v1730_v17 = vld [vmem:[%s2955_s7 + $0x8] sm:$0xff] }
 0x156   : > { %v1401_v21 = vmax.f32 %v1393_v18, 0.0  ;;  %v2308_v18 = vpack.c.bf16 %v1730_v17, %v1729_v16 }
 0x157   : > { %v1399_v23 = vmax.f32 %v1391_v19, 0.0  ;;  %v2222_v24 = vpop.f32.mrb[4].mxu0  ;;  %v2563_v19 = vmov 0.0|0.0  }
 0x158   : > { %v1407_v25 = vpack.c.bf16 %v1401_v21, %v1400_v20  ;;  %v2335_v26 = vadd.f32 %v2222_v24, %v2152_v3  ;;  %v1360_v27 = vpop.f32.mrb[5].mxu0  ;;  %v1731_v20 = vld [vmem:[%s2955_s7 + $0x10] sm:$0xff]  ;;  %v1732_v21 = vld [vmem:[%s2955_s7 + $0x18] sm:$0xff]  ;;  %v1734_v24 = vld [vmem:[%s2955_s7 + $0x28] sm:$0xff] }
 0x159   : > { %v2336_v28 = vadd.f32 %v1360_v27, %v538_v4  ;;  %v2223_v29 = vpop.f32.mrb[6].mxu0  ;;  %v1406_v30 = vpack.c.bf16 %v1399_v23, %v1398_v22  ;;  %v2311_v22 = vpack.c.bf16 %v1732_v21, %v1731_v20  ;;  %v1733_v23 = vld [vmem:[%s2955_s7 + $0x20] sm:$0xff]  ;;  %v1736_v27 = vld [vmem:[%s2955_s7 + $0x38] sm:$0xff] }
 0x15a   : > { %v1396_v31 = vadd.f32 %v2335_v26, %v2026_v8  ;;  %v2337_v32 = vadd.f32 %v2223_v29, %v2153_v5  ;;  %v1363_v33 = vpop.f32.mrb[7].mxu0  ;;  %v1735_v26 = vld [vmem:[%s2955_s7 + $0x30] sm:$0xff]  ;;  %v1737_v29 = vld [vmem:[%s2955_s7 + $0x40] sm:$0xff] }
 0x15b   : > { %v1394_v35 = vadd.f32 %v2336_v28, %v2026_v8  ;;  %v2338_v36 = vadd.f32 %v1363_v33, %v541_v6  ;;  %2240 = vmatprep.mubr.bf16.mxu1 %v1406_v30  ;;  %v2317_v28 = vpack.c.bf16 %v1736_v27, %v1735_v26  ;;  %v1738_v30 = vld [vmem:[%s2955_s7 + $0x48] sm:$0xff]  ;;  %v1740_v33 = vld [vmem:[%s2955_s7 + $0x58] sm:$0xff] }
 0x15c   : > { %v1397_v37 = vadd.f32 %v2337_v32, %v2026_v8  ;;  %2241 = vmatmul.mubr.bf16.vlgmr.msra.gmra.mrb[8].mxu1 %v1407_v25  ;;  %v1404_v39 = vmax.f32 %v1396_v31, 0.0  ;;  %v2314_v25 = vpack.c.bf16 %v1734_v24, %v1733_v23  ;;  %v2320_v31 = vpack.c.bf16 %v1738_v30, %v1737_v29  ;;  %v1739_v32 = vld [vmem:[%s2955_s7 + $0x50] sm:$0xff] }
 0x15d   : > { %v1395_v38 = vadd.f32 %v2338_v36, %v2026_v8  ;;  %2249 = vmatpush3.bf16.msra.mxu1 %v2491_v62  ;;  %v1402_v42 = vmax.f32 %v1394_v35, 0.0  ;;  %v1741_v35 = vld [vmem:[%s2955_s7 + $0x60] sm:$0xff]  ;;  %v1742_v36 = vld [vmem:[%s2955_s7 + $0x68] sm:$0xff] }
 0x15e   : > { %v1405_v40 = vmax.f32 %v1397_v37, 0.0  ;;  %2250 = vmatprep.subr.bf16.mxu1 %v2492_v34  ;;  %v2326_v37 = vpack.c.bf16 %v1742_v36, %v1741_v35 }
 0x15f   : > { %v1403_v43 = vmax.f32 %v1395_v38, 0.0  ;;  %v1743_v38 = vld [vmem:[%s2955_s7 + $0x70] sm:$0xff] }
 0x160   : > { %v1409_v44 = vpack.c.bf16 %v1405_v40, %v1404_v39  ;;  %v1744_v39 = vld [vmem:[%s2955_s7 + $0x78] sm:$0xff] }
 0x161   : > { %v1408_v45 = vpack.c.bf16 %v1403_v43, %v1402_v42  ;;  %2251 = vmatpush3.bf16.msra.mxu1 %v2492_v34  ;;  %v2323_v34 = vpack.c.bf16 %v1740_v33, %v1739_v32  ;;  %v2329_v40 = vpack.c.bf16 %v1744_v39, %v1743_v38  ;;  %v1702_v42 = vlaneseq  ;;  %v2036_v43 = vld [vmem:[%s2954_s6] ss:$0 sm:$0xff] }
 0x162   : > { %2252 = vmatprep.subr.bf16.mxu1 %v2493_v41 }
 0x163   : > { %2244 = vmatprep.mubr.bf16.mxu1 %v1408_v45 }
 0x164   : > { %2245 = vmatmul.mubr.bf16.gmra.mrb[12].mxu1 %v1409_v44  ;;  %v1703_v44 = vshrl.u32 %v1702_v42, 7 }
 0x165   : > { %2253 = vmatpush3.bf16.msra.mxu1 %v2493_v41  ;;  %v2565_v41 = vmov 0.0  }
 0x166   : > { %2254 = vmatprep.subr.bf16.mxu1 %v2494_v46  ;;  %vm1705_vm3 = vcmp.lt.s32.totalorder %v1703_v44, 4 }
 0x169   : > { %2255 = vmatpush3.bf16.msra.mxu1 %v2494_v46 }
 0x16a   : > { %2256 = vmatprep.subr.bf16.mxu1 %v2495_v47 }
 0x16d   : > { %2257 = vmatpush3.bf16.msra.mxu1 %v2495_v47 }
 0x16e   : > { %2258 = vmatprep.subr.bf16.mxu1 %v2496_v48 }
 0x171   : > { %2259 = vmatpush3.bf16.msra.mxu1 %v2496_v48 }
 0x172   : > { %2260 = vmatprep.subr.bf16.mxu1 %v2497_v49 }
 0x175   : > { %2261 = vmatpush3.bf16.msra.mxu1 %v2497_v49 }
 0x176   : > { %2262 = vmatprep.subr.bf16.mxu1 %v2498_v50 }
 0x179   : > { %2263 = vmatpush3.bf16.msra.mxu1 %v2498_v50 }
 0x17a   : > { %2307 = vmatprep.subr.bf16.mxu1 %v2563_v19 }
 0x22f   : > { %v2242_v52 = vpop.f32.mrb[8].mxu1 }
 0x230   : > { %v1524_v53 = vadd.f32 %v2242_v52, %v2027_v51  ;;  %v1515_v54 = vpop.f32.mrb[9].mxu1 }
 0x231   : > { %v1516_v55 = vadd.f32 %v2027_v51, %v1515_v54  ;;  %v2243_v56 = vpop.f32.mrb[10].mxu1 }
 0x232   : > { %v1527_v57 = vadd.f32 %v2243_v56, %v2027_v51  ;;  %v1518_v58 = vpop.f32.mrb[11].mxu1  ;;  %v1548_v60 = vmax.f32 %v1524_v53, 0.0 }
 0x233   : > { %v1519_v59 = vadd.f32 %v2027_v51, %v1518_v58  ;;  %v1546_v62 = vmax.f32 %v1516_v55, 0.0 }
 0x234   : > { %v1549_v61 = vmax.f32 %v1527_v57, 0.0 }
 0x235   : > { %v1547_v63 = vmax.f32 %v1519_v59, 0.0 }
 0x236   : > { %v1555_v0 = vpack.c.bf16 %v1549_v61, %v1548_v60 }
 0x237   : > { %v1554_v1 = vpack.c.bf16 %v1547_v63, %v1546_v62  ;;  %v2246_v2 = vpop.f32.mrb[12].mxu1 }
 0x238   : > { %v1540_v3 = vadd.f32 %v2246_v2, %v2027_v51  ;;  %v1531_v4 = vpop.f32.mrb[13].mxu1 }
 0x239   : > { %v1532_v5 = vadd.f32 %v2027_v51, %v1531_v4  ;;  %v2247_v6 = vpop.f32.mrb[14].mxu1  ;;  %2264 = vmatprep.mubr.bf16.mxu1 %v1554_v1 }
 0x23a   : > { %v1543_v7 = vadd.f32 %v2247_v6, %v2027_v51  ;;  %v1534_v8 = vpop.f32.mrb[15].mxu1  ;;  %2265 = vmatmul.mubr.bf16.vlgmr.msra.gmra.mrb[16].mxu1 %v1555_v0  ;;  %v1552_v10 = vmax.f32 %v1540_v3, 0.0 }
 0x23b   : > { %v1535_v9 = vadd.f32 %v2027_v51, %v1534_v8  ;;  %v1550_v12 = vmax.f32 %v1532_v5, 0.0  ;;  %2309 = vmatpush3.bf16.msra.mxu1 %v2308_v18 }
 0x23c   : > { %v1553_v11 = vmax.f32 %v1543_v7, 0.0  ;;  %2310 = vmatprep.subr.bf16.mxu1 %v2563_v19 }
 0x23d   : > { %v1551_v13 = vmax.f32 %v1535_v9, 0.0 }
 0x23e   : > { %v1557_v14 = vpack.c.bf16 %v1553_v11, %v1552_v10  ;;  %v1745_v11 = vld [vmem:[%s2956_s8] sm:$0x1] }
 0x23f   : > { %v1556_v15 = vpack.c.bf16 %v1551_v13, %v1550_v12  ;;  %2312 = vmatpush3.bf16.msra.mxu1 %v2311_v22 }
 0x240   : > { %2313 = vmatprep.subr.bf16.mxu1 %v2563_v19 }
 0x241   : > { %2268 = vmatprep.mubr.bf16.mxu1 %v1556_v15 }
 0x242   : > { %2269 = vmatmul.mubr.bf16.gmra.mrb[20].mxu1 %v1557_v14 }
 0x243   : > { %2315 = vmatpush3.bf16.msra.mxu1 %v2314_v25  ;;  %2304 = vmatprep.mubr.msk.f32.mxu1 %vm2564_vm2, %v2565_v41 }
 0x244   : > { %2316 = vmatprep.subr.bf16.mxu1 %v2563_v19 }
 0x247   : > { %2318 = vmatpush3.bf16.msra.mxu1 %v2317_v28 }
 0x248   : > { %2319 = vmatprep.subr.bf16.mxu1 %v2563_v19 }
 0x24b   : > { %2321 = vmatpush3.bf16.msra.mxu1 %v2320_v31 }
 0x24c   : > { %2322 = vmatprep.subr.bf16.mxu1 %v2563_v19 }
 0x24f   : > { %2324 = vmatpush3.bf16.msra.mxu1 %v2323_v34 }
 0x250   : > { %2325 = vmatprep.subr.bf16.mxu1 %v2563_v19 }
 0x253   : > { %2327 = vmatpush3.bf16.msra.mxu1 %v2326_v37 }
 0x254   : > { %2328 = vmatprep.subr.bf16.mxu1 %v2563_v19 }
 0x257   : > { %2330 = vmatpush3.bf16.msra.mxu1 %v2329_v40 }
 0x30d   : > { %v2266_v45 = vpop.f32.mrb[16].mxu1 }
 0x30e   : > { %v1672_v46 = vadd.f32 %v2266_v45, %v2036_v43  ;;  %v1663_v47 = vpop.f32.mrb[17].mxu1 }
 0x30f   : > { %v1664_v48 = vadd.f32 %v2036_v43, %v1663_v47  ;;  %v2267_v49 = vpop.f32.mrb[18].mxu1 }
 0x310   : > { %v1696_v50 = vmax.f32 %v1672_v46, 0.0  ;;  %v1666_v51 = vpop.f32.mrb[19].mxu1 }
 0x311   : > { %v1694_v52 = vmax.f32 %v1664_v48, 0.0 }
 0x312   : > { %v1709_v53 = vsel %vm1705_vm3, %v1696_v50, 0.0 }
 0x313   : > { %v1707_v54 = vsel %vm1705_vm3, %v1694_v52, 0.0 }
 0x314   : > { %v1716_v55 = vadd.f32 %v1709_v53, %v1707_v54 }
 0x315   : > { %v2270_v56 = vpop.f32.mrb[20].mxu1 }
 0x316   : > { %v1688_v57 = vadd.f32 %v2270_v56, %v2036_v43  ;;  %v1679_v58 = vpop.f32.mrb[21].mxu1 }
 0x317   : > { %v1680_v59 = vadd.f32 %v2036_v43, %v1679_v58  ;;  %v2271_v60 = vpop.f32.mrb[22].mxu1 }
 0x318   : > { %v1682_v61 = vpop.f32.mrb[23].mxu1  ;;  %v1700_v62 = vmax.f32 %v1688_v57, 0.0 }
 0x319   : > { %v1698_v63 = vmax.f32 %v1680_v59, 0.0 }
 0x31a   : > { %v1713_v2 = vsel %vm1705_vm3, %v1700_v62, 0.0 }
 0x31b   : > { %v1711_v0 = vsel %vm1705_vm3, %v1698_v63, 0.0 }
 0x31c   : > { %v1718_v1 = vadd.f32 %v1716_v55, %v1711_v0 }
 0x31e   : > { %v1720_v3 = vadd.f32 %v1718_v1, %v1713_v2 }
 0x320   : > { %v1722_v4 = vrot.slane %v1720_v3, 4 }
 0x322   : > { %v1723_v5 = vadd.f32 %v1722_v4, %v1720_v3 }
 0x324   : > { %v1724_v6 = vrot.slane %v1723_v5, 2 }
 0x326   : > { %v1725_v7 = vadd.f32 %v1724_v6, %v1723_v5 }
 0x328   : > { %v1726_v8 = vrot.slane %v1725_v7, 1 }
 0x32a   : > { %v1727_v9 = vadd.f32 %v1726_v8, %v1725_v7 }
 0x32c   : > { %v1728_v10 = vmul.f32 0.0625, %v1727_v9 }
 0x32e   : > { %2305 = vmatmul.mubr.f32.vlgmr.msra.gmra.mrb[24].mxu1 %v1728_v10 }
 0x401   : > { %v1812_v12 = vpop.f32.mrb[24].mxu1 }
 0x402   : > { %v1813_v13 = vadd.f32 %v1812_v12, %v1745_v11  ;;  %v2306_v14 = vpop.f32.mrb[25].mxu1 }
 0x404   : > { %1816 = vst [vmem:[%s324_s23] sm:$0x1] %v1813_v13 }
 0x405   : > { %2512 = shalt.err (!%p2509_p3)
}
 0x406   : > { %s2513_s14 = scalar_lea.hbm %s2906_s21, 16  ;;  %s2517_s23 = scalar_lea.hbm %s2957_s9, 32 }
 0x407   : > { %p2514_p4 = scmp.ne.s32.totalorder %s2906_s21, %s2513_s14  ;;  %p2518_p9 = scmp.lt.u32.totalorder %s2906_s21, %s2957_s9 }
 0x408   : > { %p2519_p10 = scmp.lt.u32.totalorder %s2517_s23, %s2513_s14  ;;  %p2521_p12 = scmp.lt.u32.totalorder %s2513_s14, %s2906_s21 }
 0x409   : > { %p2515_p7 = pnand %p2514_p4, %p2655_p5 }
 0x40a   : > { %p2520_p11 = por %p2519_p10, %p2518_p9 }
 0x40b   : > { %p2516_p8 = pneg %p2515_p7 }
 0x40c   : > { %p2522_p13 = por %p2521_p12, %p2520_p11 }
 0x40e   : > { %p2523_p0 = pnand %p2522_p13, %p2516_p8 }
 0x410   : > { %2526 = shalt.err (!%p2523_p0)
}
 0x411   : > { %2405 = dma.vmem_to_hbm [thread:$0]  (%p2655_p5), %s2908_s24, 16, %s2906_s21, %s1818_s27  }
 0x412 PF: > { %p2411_p1 = scmp.ge.s32.totalorder %s2561_s12, 2  ;;  %s1842_s28 = sand.u32 1, %s2549_s30  }
 0x413   : > { %s1843_s13 = scalar_lea.sflag [#allocation3], %s1842_s28 }
 0x414   : > { %p2408_p2 = pnand %p2411_p1, %p2659_p6 }
 0x416   : > { %2544 = dma.done.wait (!%p2408_p2), %s1843_s13, 16  }
 0x417   : > { %2546 = vsyncadd (!%p2408_p2), %s1843_s13, 4294967280  ;;  %p19_p3 = scmp.ge.s32.totalorder %s2642_s15, 4   ;;  %s2960_s30 = smov %s2553_s10 }
 0x418   : > { %s2961_s10 = smov %s2557_s11  ;;  %s2962_s11 = smov %s2653_s18 }
 0x419   : > { %s2963_s12 = smov %s2642_s15  ;;  %21 = sbr.rel (!%p19_p3) target bundleno = 3 (0x3), region = 104 }
 0x420   :  { %1847 = vsyncpa [#allocation3], 1 }
 0x421   :  { %1849 = vsyncpa [#allocation3 + $0x1], 1 }

</bundles_post_ra>
